<compile_context>
chip_gen: v7x
topology: tpu7x:2x2x1
jax: 0.10.0
libtpu: 0.0.40
codegen_flags: <defaults>
</compile_context>

<pallas_src>
import functools

import jax
import jax.numpy as jnp
from jax.experimental import pallas as pl
from jax.experimental.pallas import tpu as pltpu

EMB_DIM = 32
NUM_LAYER = 2
BN_EPS = 1e-5

# Same order as AtomEncoder / BondEncoder in the PyTorch reference.
ATOM_FEATURE_DIMS = [119, 12, 5, 7, 10, 8, 12]
BOND_FEATURE_DIMS = [5, 6, 2, 2]

ATOM_FEAT_OFFSETS = [0]
for _d in ATOM_FEATURE_DIMS[:-1]:
    ATOM_FEAT_OFFSETS.append(ATOM_FEAT_OFFSETS[-1] + _d)
ATOM_FEAT_TOTAL = sum(ATOM_FEATURE_DIMS)            # 173
ATOM_ROWS = ((ATOM_FEAT_TOTAL + 7) // 8) * 8        # 176 (8-aligned)

BOND_FEAT_OFFSETS = [0]
for _d in BOND_FEATURE_DIMS[:-1]:
    BOND_FEAT_OFFSETS.append(BOND_FEAT_OFFSETS[-1] + _d)
BOND_FEAT_TOTAL = sum(BOND_FEATURE_DIMS)            # 15
BOND_ROWS = ((BOND_FEAT_TOTAL + 7) // 8) * 8        # 16 (8-aligned)


# ---------------------------------------------------------------------------
# Parameter initialization (deterministic, matches shapes of the torch module)
# ---------------------------------------------------------------------------
def _xavier_uniform(key, shape):
    fan_in, fan_out = shape
    bound = (6.0 / (fan_in + fan_out)) ** 0.5
    return jax.random.uniform(key, shape, jnp.float32, -bound, bound)


def _linear_init(key, in_dim, out_dim):
    kw, kb = jax.random.split(key)
    bound = 1.0 / (in_dim ** 0.5)
    w = jax.random.uniform(kw, (in_dim, out_dim), jnp.float32, -bound, bound)
    b = jax.random.uniform(kb, (out_dim,), jnp.float32, -bound, bound)
    return w, b


def init_params(key, emb_dim, num_layer):
    keys = iter(jax.random.split(key, 64))
    params = {
        "atom_emb": [_xavier_uniform(next(keys), (d, emb_dim))
                     for d in ATOM_FEATURE_DIMS],
        "layers": [],
    }
    for _ in range(num_layer):
        lp = {}
        lp["bond_emb"] = [_xavier_uniform(next(keys), (d, emb_dim))
                          for d in BOND_FEATURE_DIMS]
        lp["w1"], lp["b1"] = _linear_init(next(keys), emb_dim, 2 * emb_dim)
        lp["w2"], lp["b2"] = _linear_init(next(keys), 2 * emb_dim, emb_dim)
        params["layers"].append(lp)
    return params


# ---------------------------------------------------------------------------
# Parameter packing: two 8-row-aligned slabs (one per lane width D / 2D).
# ---------------------------------------------------------------------------
def _pack_params(params, emb_dim, num_layer):
    D = emb_dim
    wb_off = ATOM_ROWS                         # bond tables, 16 rows / layer
    w2_off = wb_off + num_layer * BOND_ROWS    # w2 [2D, D], 2D rows / layer
    b2_off = w2_off + num_layer * 2 * D        # b2, 8 rows / layer (aligned)
    r32 = b2_off + num_layer * 8
    b1_off = num_layer * D                     # w1 [D, 2D] first, then b1
    r64 = b1_off + num_layer * 8

    s32 = jnp.zeros((r32, D), jnp.float32)
    s64 = jnp.zeros((r64, 2 * D), jnp.float32)

    w_atom = jnp.concatenate(params["atom_emb"], axis=0)          # [173, D]
    s32 = s32.at[:ATOM_FEAT_TOTAL].set(w_atom)
    for l, lp in enumerate(params["layers"]):
        wb = jnp.concatenate(lp["bond_emb"], axis=0)              # [15, D]
        s32 = s32.at[wb_off + BOND_ROWS * l:
                     wb_off + BOND_ROWS * l + BOND_FEAT_TOTAL].set(wb)
        s32 = s32.at[w2_off + 2 * D * l: w2_off + 2 * D * (l + 1)].set(lp["w2"])
        s32 = s32.at[b2_off + 8 * l].set(lp["b2"])
        s64 = s64.at[D * l: D * (l + 1)].set(lp["w1"])
        s64 = s64.at[b1_off + 8 * l].set(lp["b1"])

    offs = dict(wb_off=wb_off, w2_off=w2_off, b2_off=b2_off, b1_off=b1_off)
    return s32, s64, offs


# ---------------------------------------------------------------------------
# Fused Pallas kernel: AtomEncoder + all GIN layers in one launch.
# ---------------------------------------------------------------------------
def gnn_fused_kernel(n_ref, a_ref, xc_ref, cc_ref, s32_ref, s64_ref, out_ref,
                     *, num_layer, emb_dim, wb_off, w2_off, b2_off, b1_off):
    D = emb_dim
    inv_n = 1.0 / n_ref[0].astype(jnp.float32)      # SMEM scalar: real node count

    A = a_ref[...]            # [Np, Np] bf16  edge-count operator (adj + I)
    xc = xc_ref[...]          # [Np, 176] f32  atom-feature count operator
    cc = cc_ref[...]          # [Np, 16]  f32  bond-feature count operator
    s32 = s32_ref[...]        # packed params, lane dim D
    s64 = s64_ref[...]        # packed params, lane dim 2D

    # Row mask: every real node has a self loop counted in cc; padded rows are 0.
    mask = (jnp.sum(cc, axis=1, keepdims=True) > 0.0).astype(jnp.float32)

    # AtomEncoder folded in: x0 = Xcount @ concat(atom_tables)   (MXU)
    h = jnp.dot(xc, s32[:ATOM_ROWS], preferred_element_type=jnp.float32)

    for li in range(num_layer):                       # unrolled layer loop
        wb = s32[wb_off + BOND_ROWS * li: wb_off + BOND_ROWS * (li + 1)]  # [16, D]
        w2 = s32[w2_off + 2 * D * li: w2_off + 2 * D * (li + 1)]         # [2D, D]
        b2 = s32[b2_off + 8 * li: b2_off + 8 * li + 1]                    # [1, D]
        w1 = s64[D * li: D * (li + 1)]                                    # [D, 2D]
        b1 = s64[b1_off + 8 * li: b1_off + 8 * li + 1]                    # [1, 2D]

        # Message passing (aggr='add'):
        #   aggr[v] = sum_{e: dst(e)=v} (h[src(e)] + edge_emb[e])
        #           = A @ h + Cfeat @ concat(bond_tables)
        aggr = (jnp.dot(A, h.astype(jnp.bfloat16),
                        preferred_element_type=jnp.float32)
                + jnp.dot(cc, wb, preferred_element_type=jnp.float32))

        # GIN update MLP: Linear(D, 2D) -> ReLU -> Linear(2D, D)
        t = jnp.dot(aggr, w1, preferred_element_type=jnp.float32) + b1
        t = jnp.maximum(t, 0.0)
        t = jnp.dot(t, w2, preferred_element_type=jnp.float32) + b2

        # BatchNorm1d (train-mode batch stats, biased var, gamma=1, beta=0),
        # two-pass variance over REAL rows only.
        mean = jnp.sum(t * mask, axis=0, keepdims=True) * inv_n
        ctr = (t - mean) * mask
        var = jnp.sum(ctr * ctr, axis=0, keepdims=True) * inv_n
        t = (t - mean) * jax.lax.rsqrt(var + BN_EPS)

        if li != num_layer - 1:   # ReLU on all layers except the last
            t = jnp.maximum(t, 0.0)
        # dropout(p=0.0) -> identity
        h = t

    out_ref[...] = h * mask       # zero padded rows; sliced off in the wrapper


def gnn_fused_forward(n_true, A, xc, cc, s32, s64, *, num_layer, emb_dim, offs):
    Np = A.shape[0]
    D = emb_dim

    def full(shape):
        return pl.BlockSpec(shape, lambda i, n, _s=len(shape): (0,) * _s)

    kernel = functools.partial(gnn_fused_kernel, num_layer=num_layer,
                               emb_dim=emb_dim, **offs)
    grid_spec = pltpu.PrefetchScalarGridSpec(
        num_scalar_prefetch=1,           # n_true -> SMEM scalar
        grid=(1,),
        in_specs=[full(A.shape), full(xc.shape), full(cc.shape),
                  full(s32.shape), full(s64.shape)],
        out_specs=full((Np, D)),
    )
    return pl.pallas_call(
        kernel,
        out_shape=jax.ShapeDtypeStruct((Np, D), jnp.float32),
        grid_spec=grid_spec,
        compiler_params=pltpu.CompilerParams(
            dimension_semantics=("arbitrary",)),
    )(n_true, A, xc, cc, s32, s64)


# ---------------------------------------------------------------------------
# Forward pass (sparse->dense operator construction in JAX glue; hot path in
# the fused kernel above).  Matches GNN.forward(x, edge_index, edge_attr),
# gnn_type='gin', JK='last', drop_ratio=0.0, training-mode BatchNorm.
# ---------------------------------------------------------------------------
def gnn_forward(params, x_int, edge_index, edge_attr):
    N = x_int.shape[0]
    D = params["atom_emb"][0].shape[1]
    L = len(params["layers"])
    Np = max(128, pl.cdiv(N, 128) * 128)      # lane/MXU-native padding

    # Self loops shared by all layers (bond attr [4, 0, 0, 0]).
    ar = jnp.arange(N, dtype=edge_index.dtype)
    src = jnp.concatenate([edge_index[0], ar])
    dst = jnp.concatenate([edge_index[1], ar])
    self_loop_attr = jnp.zeros((N, 4), edge_attr.dtype).at[:, 0].set(4)
    ea = jnp.concatenate([edge_attr, self_loop_attr], axis=0)

    # Dense node-aggregation operator A[v, u] = #{edges u -> v} (incl. self loop).
    # Small integer counts -> exact in bf16; halves VMEM/HBM and doubles MXU rate.
    A = (jnp.zeros((Np, Np), jnp.float32).at[dst, src].add(1.0)
         ).astype(jnp.bfloat16)

    # Atom-feature count operator: Xcount[v, off_i + k] = 1{x[v, i] == k}.
    xc = jnp.zeros((Np, ATOM_ROWS), jnp.float32)
    nr = jnp.arange(N)
    for i in range(len(ATOM_FEATURE_DIMS)):
        xc = xc.at[nr, ATOM_FEAT_OFFSETS[i] + x_int[:, i]].add(1.0)

    # Bond-feature count operator: Cfeat[v, off_i + k] = #{e: dst(e)=v, ea[e,i]=k}.
    cc = jnp.zeros((Np, BOND_ROWS), jnp.float32)
    for i in range(len(BOND_FEATURE_DIMS)):
        cc = cc.at[dst, BOND_FEAT_OFFSETS[i] + ea[:, i]].add(1.0)

    s32, s64, offs = _pack_params(params, D, L)
    n_true = jnp.array([N], jnp.int32)

    h = gnn_fused_forward(n_true, A, xc, cc, s32, s64,
                          num_layer=L, emb_dim=D, offs=offs)
    return h[:N]     # JK == 'last': node_representation = h_list[-1]


# ---------------------------------------------------------------------------
# Main
# ---------------------------------------------------------------------------
if __name__ == "__main__":
    key = jax.random.PRNGKey(0)
    k_param, k_x, k_ei, k_ea = jax.random.split(key, 4)

    N, E = 24, 40  # nodes, (directed) edges

    params = init_params(k_param, EMB_DIM, NUM_LAYER)

    # Atom features: one integer column per categorical feature.
    xcols = []
    for i, d in enumerate(ATOM_FEATURE_DIMS):
        xcols.append(jax.random.randint(jax.random.fold_in(k_x, i),
                                        (N,), 0, d, dtype=jnp.int32))
    x_int = jnp.stack(xcols, axis=1)                       # [N, 7]

    edge_index = jax.random.randint(k_ei, (2, E), 0, N, dtype=jnp.int32)

    eacols = []
    for i, d in enumerate(BOND_FEATURE_DIMS):
        eacols.append(jax.random.randint(jax.random.fold_in(k_ea, i),
                                         (E,), 0, d, dtype=jnp.int32))
    edge_attr = jnp.stack(eacols, axis=1)                  # [E, 4]

    fwd = jax.jit(gnn_forward)
    node_repr = fwd(params, x_int, edge_index, edge_attr)
    node_repr = jax.block_until_ready(node_repr)

    assert node_repr.shape == (N, EMB_DIM)
    assert bool(jnp.all(jnp.isfinite(node_repr)))
    print("KERNEL_OK")
</pallas_src>

<mosaic_0001>
module attributes {stable_mosaic.version = 11 : i64} {
  func.func private @main(%arg0: i32) attributes {dimension_semantics = [#tpu.dimension_semantics<core_parallel>], iteration_bounds = array<i64: 2>, tpu.core_type = #tpu.core_type<sc_scalar_subcore>, window_params = []} {
    return
  }
}

module attributes {stable_mosaic.version = 11 : i64} {
  func.func private @main(%arg0: i32) attributes {dimension_semantics = [#tpu.dimension_semantics<core_parallel>], iteration_bounds = array<i64: 2>, tpu.core_type = #tpu.core_type<sc_scalar_subcore>, window_params = []} {
    return
  }
}

module attributes {stable_mosaic.version = 11 : i64} {
  func.func @gnn_fused_kernel(%arg0: i32, %arg1: memref<1xi32, #tpu.memory_space<smem>>, %arg2: memref<128x128xbf16, #tpu.memory_space<vmem>>, %arg3: memref<128x176xf32, #tpu.memory_space<vmem>>, %arg4: memref<128x16xf32, #tpu.memory_space<vmem>>, %arg5: memref<352x32xf32, #tpu.memory_space<vmem>>, %arg6: memref<80x64xf32, #tpu.memory_space<vmem>>, %arg7: memref<128x32xf32, #tpu.memory_space<vmem>>) attributes {dimension_semantics = [#tpu.dimension_semantics<arbitrary>], iteration_bounds = array<i64: 1>, scalar_prefetch = 1 : i64, scratch_operands = 0 : i64, tpu.core_type = #tpu.core_type<tc>, window_params = [{pipeline_mode = #tpu.pipeline_mode<synchronous>, transform_indices = @transform_0, window_bounds = array<i64: 128, 128>}, {pipeline_mode = #tpu.pipeline_mode<synchronous>, transform_indices = @transform_1, window_bounds = array<i64: 128, 176>}, {pipeline_mode = #tpu.pipeline_mode<synchronous>, transform_indices = @transform_2, window_bounds = array<i64: 128, 16>}, {pipeline_mode = #tpu.pipeline_mode<synchronous>, transform_indices = @transform_3, window_bounds = array<i64: 352, 32>}, {pipeline_mode = #tpu.pipeline_mode<synchronous>, transform_indices = @transform_4, window_bounds = array<i64: 80, 64>}, {pipeline_mode = #tpu.pipeline_mode<synchronous>, transform_indices = @transform_5, window_bounds = array<i64: 128, 32>}]} {
    %c0 = arith.constant 0 : index
    %0 = memref.load %arg1[%c0] : memref<1xi32, #tpu.memory_space<smem>>
    %1 = arith.sitofp %0 : i32 to f32
    %cst = arith.constant 1.000000e+00 : f32
    %2 = arith.divf %cst, %1 : f32
    %c0_0 = arith.constant 0 : index
    %c0_1 = arith.constant 0 : index
    %3 = vector.load %arg2[%c0_0, %c0_1] : memref<128x128xbf16, #tpu.memory_space<vmem>>, vector<128x128xbf16>
    %c0_2 = arith.constant 0 : index
    %c0_3 = arith.constant 0 : index
    %4 = vector.load %arg3[%c0_2, %c0_3] : memref<128x176xf32, #tpu.memory_space<vmem>>, vector<128x176xf32>
    %c0_4 = arith.constant 0 : index
    %c0_5 = arith.constant 0 : index
    %5 = vector.load %arg4[%c0_4, %c0_5] : memref<128x16xf32, #tpu.memory_space<vmem>>, vector<128x16xf32>
    %c0_6 = arith.constant 0 : index
    %c0_7 = arith.constant 0 : index
    %6 = vector.load %arg5[%c0_6, %c0_7] : memref<352x32xf32, #tpu.memory_space<vmem>>, vector<352x32xf32>
    %c0_8 = arith.constant 0 : index
    %c0_9 = arith.constant 0 : index
    %7 = vector.load %arg6[%c0_8, %c0_9] : memref<80x64xf32, #tpu.memory_space<vmem>>, vector<80x64xf32>
    %cst_10 = arith.constant dense<0.000000e+00> : vector<128xf32>
    %8 = vector.multi_reduction <add>, %5, %cst_10 [1] : vector<128x16xf32> to vector<128xf32>
    %9 = vector.shape_cast %8 : vector<128xf32> to vector<128x1xf32>
    %cst_11 = arith.constant 0.000000e+00 : f32
    %10 = vector.broadcast %cst_11 : f32 to vector<128x1xf32>
    %11 = arith.cmpf ogt, %9, %10 : vector<128x1xf32>
    %12 = arith.extui %11 : vector<128x1xi1> to vector<128x1xi32>
    %13 = arith.sitofp %12 : vector<128x1xi32> to vector<128x1xf32>
    %14 = vector.extract_strided_slice %6 {offsets = [0, 0], sizes = [176, 32], strides = [1, 1]} : vector<352x32xf32> to vector<176x32xf32>
    %cst_12 = arith.constant dense<0.000000e+00> : vector<128x32xf32>
    %15 = tpu.matmul %4, %14, %cst_12 {dimension_numbers = #tpu.dot_dimension_numbers<[1], [0], [0], [1], [0, 0, 1, 1], [], []>} : vector<128x176xf32>, vector<176x32xf32>, vector<128x32xf32> -> vector<128x32xf32>
    %16 = vector.extract_strided_slice %6 {offsets = [176, 0], sizes = [16, 32], strides = [1, 1]} : vector<352x32xf32> to vector<16x32xf32>
    %17 = vector.extract_strided_slice %6 {offsets = [208, 0], sizes = [64, 32], strides = [1, 1]} : vector<352x32xf32> to vector<64x32xf32>
    %18 = vector.extract_strided_slice %6 {offsets = [336, 0], sizes = [1, 32], strides = [1, 1]} : vector<352x32xf32> to vector<1x32xf32>
    %19 = vector.extract_strided_slice %7 {offsets = [0, 0], sizes = [32, 64], strides = [1, 1]} : vector<80x64xf32> to vector<32x64xf32>
    %20 = vector.extract_strided_slice %7 {offsets = [64, 0], sizes = [1, 64], strides = [1, 1]} : vector<80x64xf32> to vector<1x64xf32>
    %21 = arith.truncf %15 : vector<128x32xf32> to vector<128x32xbf16>
    %cst_13 = arith.constant dense<0.000000e+00> : vector<128x32xf32>
    %22 = tpu.matmul %3, %21, %cst_13 {dimension_numbers = #tpu.dot_dimension_numbers<[1], [0], [0], [1], [0, 0, 1, 1], [], []>} : vector<128x128xbf16>, vector<128x32xbf16>, vector<128x32xf32> -> vector<128x32xf32>
    %cst_14 = arith.constant dense<0.000000e+00> : vector<128x32xf32>
    %23 = tpu.matmul %5, %16, %cst_14 {dimension_numbers = #tpu.dot_dimension_numbers<[1], [0], [0], [1], [0, 0, 1, 1], [], []>} : vector<128x16xf32>, vector<16x32xf32>, vector<128x32xf32> -> vector<128x32xf32>
    %24 = arith.addf %22, %23 : vector<128x32xf32>
    %cst_15 = arith.constant dense<0.000000e+00> : vector<128x64xf32>
    %25 = tpu.matmul %24, %19, %cst_15 {dimension_numbers = #tpu.dot_dimension_numbers<[1], [0], [0], [1], [0, 0, 1, 1], [], []>} : vector<128x32xf32>, vector<32x64xf32>, vector<128x64xf32> -> vector<128x64xf32>
    %26 = vector.broadcast %20 : vector<1x64xf32> to vector<128x64xf32>
    %27 = arith.addf %25, %26 : vector<128x64xf32>
    %cst_16 = arith.constant 0.000000e+00 : f32
    %28 = vector.broadcast %cst_16 : f32 to vector<128x64xf32>
    %29 = arith.maximumf %27, %28 : vector<128x64xf32>
    %cst_17 = arith.constant dense<0.000000e+00> : vector<128x32xf32>
    %30 = tpu.matmul %29, %17, %cst_17 {dimension_numbers = #tpu.dot_dimension_numbers<[1], [0], [0], [1], [0, 0, 1, 1], [], []>} : vector<128x64xf32>, vector<64x32xf32>, vector<128x32xf32> -> vector<128x32xf32>
    %31 = vector.broadcast %18 : vector<1x32xf32> to vector<128x32xf32>
    %32 = arith.addf %30, %31 : vector<128x32xf32>
    %33 = vector.broadcast %13 : vector<128x1xf32> to vector<128x32xf32>
    %34 = arith.mulf %32, %33 : vector<128x32xf32>
    %cst_18 = arith.constant dense<0.000000e+00> : vector<32xf32>
    %35 = vector.multi_reduction <add>, %34, %cst_18 [0] : vector<128x32xf32> to vector<32xf32>
    %36 = vector.shape_cast %35 : vector<32xf32> to vector<1x32xf32>
    %37 = vector.broadcast %2 : f32 to vector<1x32xf32>
    %38 = arith.mulf %36, %37 : vector<1x32xf32>
    %39 = vector.broadcast %38 : vector<1x32xf32> to vector<128x32xf32>
    %40 = arith.subf %32, %39 : vector<128x32xf32>
    %41 = vector.broadcast %13 : vector<128x1xf32> to vector<128x32xf32>
    %42 = arith.mulf %40, %41 : vector<128x32xf32>
    %43 = arith.mulf %42, %42 : vector<128x32xf32>
    %cst_19 = arith.constant dense<0.000000e+00> : vector<32xf32>
    %44 = vector.multi_reduction <add>, %43, %cst_19 [0] : vector<128x32xf32> to vector<32xf32>
    %45 = vector.shape_cast %44 : vector<32xf32> to vector<1x32xf32>
    %46 = vector.broadcast %2 : f32 to vector<1x32xf32>
    %47 = arith.mulf %45, %46 : vector<1x32xf32>
    %48 = vector.broadcast %38 : vector<1x32xf32> to vector<128x32xf32>
    %49 = arith.subf %32, %48 : vector<128x32xf32>
    %cst_20 = arith.constant 9.99999974E-6 : f32
    %50 = vector.broadcast %cst_20 : f32 to vector<1x32xf32>
    %51 = arith.addf %47, %50 : vector<1x32xf32>
    %52 = math.rsqrt %51 : vector<1x32xf32>
    %53 = vector.broadcast %52 : vector<1x32xf32> to vector<128x32xf32>
    %54 = arith.mulf %49, %53 : vector<128x32xf32>
    %cst_21 = arith.constant 0.000000e+00 : f32
    %55 = vector.broadcast %cst_21 : f32 to vector<128x32xf32>
    %56 = arith.maximumf %54, %55 : vector<128x32xf32>
    %57 = vector.extract_strided_slice %6 {offsets = [192, 0], sizes = [16, 32], strides = [1, 1]} : vector<352x32xf32> to vector<16x32xf32>
    %58 = vector.extract_strided_slice %6 {offsets = [272, 0], sizes = [64, 32], strides = [1, 1]} : vector<352x32xf32> to vector<64x32xf32>
    %59 = vector.extract_strided_slice %6 {offsets = [344, 0], sizes = [1, 32], strides = [1, 1]} : vector<352x32xf32> to vector<1x32xf32>
    %60 = vector.extract_strided_slice %7 {offsets = [32, 0], sizes = [32, 64], strides = [1, 1]} : vector<80x64xf32> to vector<32x64xf32>
    %61 = vector.extract_strided_slice %7 {offsets = [72, 0], sizes = [1, 64], strides = [1, 1]} : vector<80x64xf32> to vector<1x64xf32>
    %62 = arith.truncf %56 : vector<128x32xf32> to vector<128x32xbf16>
    %cst_22 = arith.constant dense<0.000000e+00> : vector<128x32xf32>
    %63 = tpu.matmul %3, %62, %cst_22 {dimension_numbers = #tpu.dot_dimension_numbers<[1], [0], [0], [1], [0, 0, 1, 1], [], []>} : vector<128x128xbf16>, vector<128x32xbf16>, vector<128x32xf32> -> vector<128x32xf32>
    %cst_23 = arith.constant dense<0.000000e+00> : vector<128x32xf32>
    %64 = tpu.matmul %5, %57, %cst_23 {dimension_numbers = #tpu.dot_dimension_numbers<[1], [0], [0], [1], [0, 0, 1, 1], [], []>} : vector<128x16xf32>, vector<16x32xf32>, vector<128x32xf32> -> vector<128x32xf32>
    %65 = arith.addf %63, %64 : vector<128x32xf32>
    %cst_24 = arith.constant dense<0.000000e+00> : vector<128x64xf32>
    %66 = tpu.matmul %65, %60, %cst_24 {dimension_numbers = #tpu.dot_dimension_numbers<[1], [0], [0], [1], [0, 0, 1, 1], [], []>} : vector<128x32xf32>, vector<32x64xf32>, vector<128x64xf32> -> vector<128x64xf32>
    %67 = vector.broadcast %61 : vector<1x64xf32> to vector<128x64xf32>
    %68 = arith.addf %66, %67 : vector<128x64xf32>
    %cst_25 = arith.constant 0.000000e+00 : f32
    %69 = vector.broadcast %cst_25 : f32 to vector<128x64xf32>
    %70 = arith.maximumf %68, %69 : vector<128x64xf32>
    %cst_26 = arith.constant dense<0.000000e+00> : vector<128x32xf32>
    %71 = tpu.matmul %70, %58, %cst_26 {dimension_numbers = #tpu.dot_dimension_numbers<[1], [0], [0], [1], [0, 0, 1, 1], [], []>} : vector<128x64xf32>, vector<64x32xf32>, vector<128x32xf32> -> vector<128x32xf32>
    %72 = vector.broadcast %59 : vector<1x32xf32> to vector<128x32xf32>
    %73 = arith.addf %71, %72 : vector<128x32xf32>
    %74 = vector.broadcast %13 : vector<128x1xf32> to vector<128x32xf32>
    %75 = arith.mulf %73, %74 : vector<128x32xf32>
    %cst_27 = arith.constant dense<0.000000e+00> : vector<32xf32>
    %76 = vector.multi_reduction <add>, %75, %cst_27 [0] : vector<128x32xf32> to vector<32xf32>
    %77 = vector.shape_cast %76 : vector<32xf32> to vector<1x32xf32>
    %78 = vector.broadcast %2 : f32 to vector<1x32xf32>
    %79 = arith.mulf %77, %78 : vector<1x32xf32>
    %80 = vector.broadcast %79 : vector<1x32xf32> to vector<128x32xf32>
    %81 = arith.subf %73, %80 : vector<128x32xf32>
    %82 = vector.broadcast %13 : vector<128x1xf32> to vector<128x32xf32>
    %83 = arith.mulf %81, %82 : vector<128x32xf32>
    %84 = arith.mulf %83, %83 : vector<128x32xf32>
    %cst_28 = arith.constant dense<0.000000e+00> : vector<32xf32>
    %85 = vector.multi_reduction <add>, %84, %cst_28 [0] : vector<128x32xf32> to vector<32xf32>
    %86 = vector.shape_cast %85 : vector<32xf32> to vector<1x32xf32>
    %87 = vector.broadcast %2 : f32 to vector<1x32xf32>
    %88 = arith.mulf %86, %87 : vector<1x32xf32>
    %89 = vector.broadcast %79 : vector<1x32xf32> to vector<128x32xf32>
    %90 = arith.subf %73, %89 : vector<128x32xf32>
    %cst_29 = arith.constant 9.99999974E-6 : f32
    %91 = vector.broadcast %cst_29 : f32 to vector<1x32xf32>
    %92 = arith.addf %88, %91 : vector<1x32xf32>
    %93 = math.rsqrt %92 : vector<1x32xf32>
    %94 = vector.broadcast %93 : vector<1x32xf32> to vector<128x32xf32>
    %95 = arith.mulf %90, %94 : vector<128x32xf32>
    %96 = vector.broadcast %13 : vector<128x1xf32> to vector<128x32xf32>
    %97 = arith.mulf %95, %96 : vector<128x32xf32>
    %c0_30 = arith.constant 0 : index
    %c0_31 = arith.constant 0 : index
    %98 = vector.load %arg7[%c0_30, %c0_31] : memref<128x32xf32, #tpu.memory_space<vmem>>, vector<128x32xf32>
    tpu.vector_store %arg7[%c0_30, %c0_31], %97 {strides = array<i32>} : memref<128x32xf32, #tpu.memory_space<vmem>>, vector<128x32xf32>,
    return
  }
  func.func @transform_0(%arg0: i32, %arg1: memref<1xi32, #tpu.memory_space<smem>>) -> (i32, i32) {
    %c0_i32 = arith.constant 0 : i32
    %c0_i32_0 = arith.constant 0 : i32
    %c0_i32_1 = arith.constant 0 : i32
    return %c0_i32, %c0_i32_0 : i32, i32
  }
  func.func @transform_1(%arg0: i32, %arg1: memref<1xi32, #tpu.memory_space<smem>>) -> (i32, i32) {
    %c0_i32 = arith.constant 0 : i32
    %c0_i32_0 = arith.constant 0 : i32
    %c0_i32_1 = arith.constant 0 : i32
    return %c0_i32, %c0_i32_0 : i32, i32
  }
  func.func @transform_2(%arg0: i32, %arg1: memref<1xi32, #tpu.memory_space<smem>>) -> (i32, i32) {
    %c0_i32 = arith.constant 0 : i32
    %c0_i32_0 = arith.constant 0 : i32
    %c0_i32_1 = arith.constant 0 : i32
    return %c0_i32, %c0_i32_0 : i32, i32
  }
  func.func @transform_3(%arg0: i32, %arg1: memref<1xi32, #tpu.memory_space<smem>>) -> (i32, i32) {
    %c0_i32 = arith.constant 0 : i32
    %c0_i32_0 = arith.constant 0 : i32
    %c0_i32_1 = arith.constant 0 : i32
    return %c0_i32, %c0_i32_0 : i32, i32
  }
  func.func @transform_4(%arg0: i32, %arg1: memref<1xi32, #tpu.memory_space<smem>>) -> (i32, i32) {
    %c0_i32 = arith.constant 0 : i32
    %c0_i32_0 = arith.constant 0 : i32
    %c0_i32_1 = arith.constant 0 : i32
    return %c0_i32, %c0_i32_0 : i32, i32
  }
  func.func @transform_5(%arg0: i32, %arg1: memref<1xi32, #tpu.memory_space<smem>>) -> (i32, i32) {
    %c0_i32 = arith.constant 0 : i32
    %c0_i32_0 = arith.constant 0 : i32
    %c0_i32_1 = arith.constant 0 : i32
    return %c0_i32, %c0_i32_0 : i32, i32
  }
}

</mosaic_0001>

<bundles_post_ra>
// kernel: gnn_forward.1
= control target key start
LH: loop header
LB: loop body
LE: loop exit
PB: predicated region body
PF: predicated region fallthrough
CT: control target
= control target key end

     0   :  { %v2898_v0 = vmov 0.0|0.0   ;;  %vm243_vm0 = vcmask 392192   ;;  %vm146_vm1 = vcmask 130048   ;;  %vm787_vm2 = vcmask 261120   ;;  %s4038_s4 = inlined_call_operand.vmem [shape: f32[352,32], index: 4, kind: input, shape index: {}]   ;;  %s4039_s2 = inlined_call_operand.vmem [shape: f32[128,176], index: 2, kind: input, shape index: {}]   ;;  %s4040_s3 = inlined_call_operand.vmem [shape: f32[128,16], index: 3, kind: input, shape index: {}]   ;;  %s4041_s1 = inlined_call_operand.vmem [shape: bf16[128,128], index: 1, kind: input, shape index: {}]   ;;  %s4042_s5 = inlined_call_operand.vmem [shape: f32[80,64], index: 5, kind: input, shape index: {}]   ;;  %s4043_s0 = inlined_call_operand.<no memory space> [shape: s32[1], index: 0, kind: input, shape index: {}]   ;;  %s4044_s6 = inlined_call_operand.vmem [shape: f32[128,32], index: 6, kind: output, shape index: {}]  }
   0x1   :  { %2780 = vmatprep.subr.bf16.mxu0 %v2898_v0  ;;  %v92_v1 = vld [vmem:[%s4038_s4] sm:$0xff]  ;;  %v93_v2 = vld [vmem:[%s4038_s4 + $0x8] sm:$0xff]  ;;  %v94_v3 = vld [vmem:[%s4038_s4 + $0x10] sm:$0xff]  ;;  %s24_s10 = scvt.s32.f32 %s4043_s0  ;;  %vm1001_vm3 = vcmask 523264  }
   0x2   :  { %v2781_v4 = vpack.c.bf16 %v93_v2, %v92_v1  ;;  %v95_v5 = vld [vmem:[%s4038_s4 + $0x18] sm:$0xff]  ;;  %v96_v7 = vld [vmem:[%s4038_s4 + $0x20] sm:$0xff]  ;;  %v97_v8 = vld [vmem:[%s4038_s4 + $0x28] sm:$0xff] }
   0x3   :  { %v2784_v6 = vpack.c.bf16 %v95_v5, %v94_v3  ;;  %v2787_v9 = vpack.c.bf16 %v97_v8, %v96_v7  ;;  %v45_v10 = vld [vmem:[%s4039_s2 + $0x8] sm:$0xff]  ;;  %v98_v11 = vld [vmem:[%s4038_s4 + $0x30] sm:$0xff]  ;;  %v99_v12 = vld [vmem:[%s4038_s4 + $0x38] sm:$0xff] }
   0x4   :  { %2782 = vmatpush1.bf16.msra.mxu0 %v2781_v4  ;;  %2240 = vmatprep.mubr.msk.f32.mxu0 %vm243_vm0, %v45_v10  ;;  %v2790_v13 = vpack.c.bf16 %v99_v12, %v98_v11  ;;  %v100_v14 = vld [vmem:[%s4038_s4 + $0x40] sm:$0xff]  ;;  %v101_v15 = vld [vmem:[%s4038_s4 + $0x48] sm:$0xff]  ;;  %v102_v17 = vld [vmem:[%s4038_s4 + $0x50] sm:$0xff] }
   0x5   :  { %2783 = vmatprep.subr.bf16.mxu0 %v2898_v0  ;;  %v2793_v16 = vpack.c.bf16 %v101_v15, %v100_v14  ;;  %v103_v18 = vld [vmem:[%s4038_s4 + $0x58] sm:$0xff]  ;;  %v104_v20 = vld [vmem:[%s4038_s4 + $0x60] sm:$0xff]  ;;  %v105_v21 = vld [vmem:[%s4038_s4 + $0x68] sm:$0xff] }
   0x6   :  { %v2796_v19 = vpack.c.bf16 %v103_v18, %v102_v17  ;;  %v2799_v22 = vpack.c.bf16 %v105_v21, %v104_v20  ;;  %v106_v23 = vld [vmem:[%s4038_s4 + $0x70] sm:$0xff]  ;;  %v107_v24 = vld [vmem:[%s4038_s4 + $0x78] sm:$0xff]  ;;  %v108_v26 = vld [vmem:[%s4038_s4 + $0x80] sm:$0xff] }
   0x7   :  { %v2802_v25 = vpack.c.bf16 %v107_v24, %v106_v23  ;;  %v109_v27 = vld [vmem:[%s4038_s4 + $0x88] sm:$0xff]  ;;  %v110_v29 = vld [vmem:[%s4038_s4 + $0x90] sm:$0xff]  ;;  %v111_v30 = vld [vmem:[%s4038_s4 + $0x98] sm:$0xff] }
   0x8   :  { %2785 = vmatpush1.bf16.msra.mxu0 %v2784_v6  ;;  %v2805_v28 = vpack.c.bf16 %v109_v27, %v108_v26  ;;  %v2808_v31 = vpack.c.bf16 %v111_v30, %v110_v29  ;;  %v112_v32 = vld [vmem:[%s4038_s4 + $0xa0] sm:$0xff]  ;;  %v113_v33 = vld [vmem:[%s4038_s4 + $0xa8] sm:$0xff]  ;;  %v47_v36 = vld [vmem:[%s4039_s2 + $0x18] sm:$0xff] }
   0x9   :  { %2786 = vmatprep.subr.bf16.mxu0 %v2898_v0  ;;  %v2811_v34 = vpack.c.bf16 %v113_v33, %v112_v32  ;;  %v44_v35 = vld [vmem:[%s4039_s2] sm:$0xff]  ;;  %v46_v37 = vld [vmem:[%s4039_s2 + $0x10] sm:$0xff]  ;;  %v49_v38 = vld [vmem:[%s4039_s2 + $0x28] sm:$0xff] }
   0xa   :  { %v48_v39 = vld [vmem:[%s4039_s2 + $0x20] sm:$0xff]  ;;  %v51_v40 = vld [vmem:[%s4039_s2 + $0x38] sm:$0xff]  ;;  %v50_v41 = vld [vmem:[%s4039_s2 + $0x30] sm:$0xff] }
   0xb   :  { %v53_v42 = vld [vmem:[%s4039_s2 + $0x48] sm:$0xff]  ;;  %v52_v43 = vld [vmem:[%s4039_s2 + $0x40] sm:$0xff]  ;;  %v55_v44 = vld [vmem:[%s4039_s2 + $0x58] sm:$0xff] }
   0xc   :  { %2788 = vmatpush1.bf16.msra.mxu0 %v2787_v9  ;;  %v54_v45 = vld [vmem:[%s4039_s2 + $0x50] sm:$0xff]  ;;  %v57_v46 = vld [vmem:[%s4039_s2 + $0x68] sm:$0xff]  ;;  %v56_v47 = vld [vmem:[%s4039_s2 + $0x60] sm:$0xff] }
   0xd   :  { %2789 = vmatprep.subr.bf16.mxu0 %v2898_v0  ;;  %v59_v48 = vld [vmem:[%s4039_s2 + $0x78] sm:$0xff]  ;;  %v58_v49 = vld [vmem:[%s4039_s2 + $0x70] sm:$0xff]  ;;  %v61_v50 = vld [vmem:[%s4039_s2 + $0x88] sm:$0xff] }
   0xe   :  { %v60_v51 = vld [vmem:[%s4039_s2 + $0x80] sm:$0xff]  ;;  %v63_v52 = vld [vmem:[%s4039_s2 + $0x98] sm:$0xff]  ;;  %v62_v53 = vld [vmem:[%s4039_s2 + $0x90] sm:$0xff] }
   0xf   :  { %v65_v54 = vld [vmem:[%s4039_s2 + $0xa8] sm:$0xff]  ;;  %v64_v55 = vld [vmem:[%s4039_s2 + $0xa0] sm:$0xff]  ;;  %v67_v56 = vld [vmem:[%s4039_s2 + $0xb8] sm:$0xff] }
  0x10   :  { %2791 = vmatpush1.bf16.msra.mxu0 %v2790_v13  ;;  %v66_v57 = vld [vmem:[%s4039_s2 + $0xb0] sm:$0xff]  ;;  %v69_v58 = vld [vmem:[%s4039_s2 + $0xc8] sm:$0xff]  ;;  %v68_v59 = vld [vmem:[%s4039_s2 + $0xc0] sm:$0xff] }
  0x11   :  { %2792 = vmatprep.subr.bf16.mxu0 %v2898_v0  ;;  %v71_v60 = vld [vmem:[%s4039_s2 + $0xd8] sm:$0xff]  ;;  %v70_v61 = vld [vmem:[%s4039_s2 + $0xd0] sm:$0xff]  ;;  %v73_v62 = vld [vmem:[%s4039_s2 + $0xe8] sm:$0xff] }
  0x12   :  { %v72_v63 = vld [vmem:[%s4039_s2 + $0xe0] sm:$0xff]  ;;  %v74_v1 = vld [vmem:[%s4039_s2 + $0xf0] sm:$0xff]  ;;  %v115_v3 = vld [vmem:[%s4038_s4 + $0xb8] sm:$0xff] }
  0x13   :  { %v114_v2 = vld [vmem:[%s4038_s4 + $0xb0] sm:$0xff]  ;;  %v3122_v5 = vld [vmem:[%s4040_s3] sm:$0xff]  ;;  %v3129_v6 = vld [vmem:[%s4040_s3 + $0x8] sm:$0xff] }
  0x14   :  { %2794 = vmatpush1.bf16.msra.mxu0 %v2793_v16  ;;  %v2813_v4 = vpack.c.bf16 %v115_v3, %v114_v2  ;;  %2520 = vmatprep.mubr.msk.f32.mxu1 %vm146_vm1, %v3122_v5  ;;  %v3136_v7 = vld [vmem:[%s4040_s3 + $0x10] sm:$0xff]  ;;  %v3143_v8 = vld [vmem:[%s4040_s3 + $0x18] sm:$0xff]  ;;  %v3150_v9 = vld [vmem:[%s4040_s3 + $0x20] sm:$0xff] }
  0x15   :  { %2795 = vmatprep.subr.bf16.mxu0 %v2898_v0  ;;  %v3157_v10 = vld [vmem:[%s4040_s3 + $0x28] sm:$0xff]  ;;  %v3164_v11 = vld [vmem:[%s4040_s3 + $0x30] sm:$0xff]  ;;  %v3171_v12 = vld [vmem:[%s4040_s3 + $0x38] sm:$0xff] }
  0x16   :  { %2814 = vmatprep.subr.bf16.mxu1 %v2813_v4  ;;  %v3178_v13 = vld [vmem:[%s4040_s3 + $0x40] sm:$0xff]  ;;  %v3185_v14 = vld [vmem:[%s4040_s3 + $0x48] sm:$0xff]  ;;  %v3192_v15 = vld [vmem:[%s4040_s3 + $0x50] sm:$0xff] }
  0x17   :  { %2816 = vmatpush3.bf16.msra.mxu1 %v2813_v4  ;;  %v3199_v16 = vld [vmem:[%s4040_s3 + $0x58] sm:$0xff]  ;;  %v3206_v17 = vld [vmem:[%s4040_s3 + $0x60] sm:$0xff]  ;;  %v3213_v18 = vld [vmem:[%s4040_s3 + $0x68] sm:$0xff] }
  0x18   :  { %2797 = vmatpush1.bf16.msra.mxu0 %v2796_v19  ;;  %v3220_v19 = vld [vmem:[%s4040_s3 + $0x70] sm:$0xff]  ;;  %v3227_v20 = vld [vmem:[%s4040_s3 + $0x78] sm:$0xff]  ;;  %v3234_v21 = vld [vmem:[%s4041_s1] sm:$0xff]  }
  0x19   :  { %2798 = vmatprep.subr.bf16.mxu0 %v2898_v0  ;;  %v137_v23 = vld [vmem:[%s4042_s5 + $0x8] sm:$0xff]  ;;  %v139_v26 = vld [vmem:[%s4042_s5 + $0x18] sm:$0xff] }
  0x1a   :  { %2521 = vmatmul.mubr.msk.f32.vlgmr.msra.gmra.mrb[0].mxu1 %vm146_vm1, %v3129_v6  ;;  %v2878_v4 = vld [vmem:[%s4041_s1 + $0x8] sm:$0xff]  }
  0x1b   :  { %2523 = vmatprep.mubr.msk.f32.mxu1 %vm146_vm1, %v3136_v7 }
  0x1c   :  { %2800 = vmatpush1.bf16.msra.mxu0 %v2799_v22  ;;  %v136_v22 = vld [vmem:[%s4042_s5] sm:$0xff] }
  0x1d   :  { %2801 = vmatprep.subr.bf16.mxu0 %v2898_v0  ;;  %v3243_v24 = vpack.c.bf16 %v137_v23, %v136_v22  ;;  %v2879_v22 = vld [vmem:[%s4041_s1 + $0x10] sm:$0xff]   ;;  %v2880_v23 = vld [vmem:[%s4041_s1 + $0x18] sm:$0xff]  }
  0x1e   :  { %2524 = vmatmul.mubr.msk.f32.gmra.mrb[2].mxu1 %vm146_vm1, %v3143_v8 }
  0x1f   :  { %2526 = vmatprep.mubr.msk.f32.mxu1 %vm146_vm1, %v3150_v9 }
  0x20   :  { %2803 = vmatpush1.bf16.msra.mxu0 %v2802_v25  ;;  %v138_v25 = vld [vmem:[%s4042_s5 + $0x10] sm:$0xff] }
  0x21   :  { %2804 = vmatprep.subr.bf16.mxu0 %v2898_v0  ;;  %v3253_v27 = vpack.c.bf16 %v139_v26, %v138_v25  ;;  %v2881_v25 = vld [vmem:[%s4041_s1 + $0x20] sm:$0xff]   ;;  %v2882_v26 = vld [vmem:[%s4041_s1 + $0x28] sm:$0xff]  }
  0x22   :  { %2527 = vmatmul.mubr.msk.f32.gmra.mrb[4].mxu1 %vm146_vm1, %v3157_v10 }
  0x23   :  { %2529 = vmatprep.mubr.msk.f32.mxu1 %vm146_vm1, %v3164_v11 }
  0x24   :  { %2806 = vmatpush1.bf16.msra.mxu0 %v2805_v28 }
  0x25   :  { %2807 = vmatprep.subr.bf16.mxu0 %v2898_v0 }
  0x26   :  { %2530 = vmatmul.mubr.msk.f32.gmra.mrb[6].mxu1 %vm146_vm1, %v3171_v12 }
  0x27   :  { %2532 = vmatprep.mubr.msk.f32.mxu1 %vm146_vm1, %v3178_v13 }
  0x28   :  { %2809 = vmatpush1.bf16.msra.mxu0 %v2808_v31 }
  0x29   :  { %2810 = vmatprep.subr.bf16.mxu0 %v2898_v0  ;;  %v75_v0 = vld [vmem:[%s4039_s2 + $0xf8] sm:$0xff] }
  0x2a   :  { %2533 = vmatmul.mubr.msk.f32.gmra.mrb[8].mxu1 %vm146_vm1, %v3185_v14 }
  0x2b   :  { %2535 = vmatprep.mubr.msk.f32.mxu1 %vm146_vm1, %v3192_v15 }
  0x2c   :  { %2812 = vmatpush1.bf16.msra.mxu0 %v2811_v34 }
  0x2d   :  { %2818 = vmatprep.subr.bf16.mxu0 %v3243_v24 }
  0x2e   :  { %2536 = vmatmul.mubr.msk.f32.gmra.mrb[10].mxu1 %vm146_vm1, %v3199_v16 }
  0x2f   :  { %357 = vmatmul.mubr.f32.vlgmr.msra.gmra.mrb[0].mxu0 %v44_v35  ;;  %2538 = vmatprep.mubr.msk.f32.mxu1 %vm146_vm1, %v3206_v17 }
  0x30   :  { %2241 = vmatprep.mubr.msk.f32.mxu0 %vm243_vm0, %v47_v36  ;;  %2820 = vmatpush3.bf16.msra.mxu0 %v3243_v24 }
  0x31   :  { %2822 = vmatprep.subr.bf16.mxu0 %v3253_v27 }
  0x32   :  { %2539 = vmatmul.mubr.msk.f32.gmra.mrb[12].mxu1 %vm146_vm1, %v3213_v18 }
  0x33   :  { %362 = vmatmul.mubr.f32.gmra.mrb[2].mxu0 %v46_v37  ;;  %2541 = vmatprep.mubr.msk.f32.mxu1 %vm146_vm1, %v3220_v19 }
  0x34   :  { %2242 = vmatprep.mubr.msk.f32.mxu0 %vm243_vm0, %v49_v38  ;;  %2824 = vmatpush3.bf16.msra.mxu0 %v3253_v27 }
  0x36   :  { %2542 = vmatmul.mubr.msk.f32.gmra.mrb[14].mxu1 %vm146_vm1, %v3227_v20 }
  0x37   :  { %367 = vmatmul.mubr.f32.gmra.mrb[4].mxu0 %v48_v39  ;;  %2560 = vmatprep.mubr.bf16.mxu1 %v3234_v21 }
  0x38   :  { %2243 = vmatprep.mubr.msk.f32.mxu0 %vm243_vm0, %v51_v40 }
  0x3b   :  { %372 = vmatmul.mubr.f32.gmra.mrb[6].mxu0 %v50_v41 }
  0x3c   :  { %2244 = vmatprep.mubr.msk.f32.mxu0 %vm243_vm0, %v53_v42 }
  0x3f   :  { %377 = vmatmul.mubr.f32.gmra.mrb[8].mxu0 %v52_v43 }
  0x40   :  { %2245 = vmatprep.mubr.msk.f32.mxu0 %vm243_vm0, %v55_v44 }
  0x43   :  { %382 = vmatmul.mubr.f32.gmra.mrb[10].mxu0 %v54_v45 }
  0x44   :  { %2246 = vmatprep.mubr.msk.f32.mxu0 %vm243_vm0, %v57_v46 }
  0x47   :  { %387 = vmatmul.mubr.f32.gmra.mrb[12].mxu0 %v56_v47 }
  0x48   :  { %2247 = vmatprep.mubr.msk.f32.mxu0 %vm243_vm0, %v59_v48 }
  0x4b   :  { %392 = vmatmul.mubr.f32.gmra.mrb[14].mxu0 %v58_v49 }
  0x4c   :  { %2248 = vmatprep.mubr.msk.f32.mxu0 %vm243_vm0, %v61_v50 }
  0x4f   :  { %397 = vmatmul.mubr.f32.gmra.mrb[16].mxu0 %v60_v51 }
  0x50   :  { %2249 = vmatprep.mubr.msk.f32.mxu0 %vm243_vm0, %v63_v52 }
  0x53   :  { %402 = vmatmul.mubr.f32.gmra.mrb[18].mxu0 %v62_v53 }
  0x54   :  { %2250 = vmatprep.mubr.msk.f32.mxu0 %vm243_vm0, %v65_v54 }
  0x57   :  { %407 = vmatmul.mubr.f32.gmra.mrb[20].mxu0 %v64_v55 }
  0x58   :  { %2251 = vmatprep.mubr.msk.f32.mxu0 %vm243_vm0, %v67_v56 }
  0x5b   :  { %412 = vmatmul.mubr.f32.gmra.mrb[22].mxu0 %v66_v57 }
  0x5c   :  { %2252 = vmatprep.mubr.msk.f32.mxu0 %vm243_vm0, %v69_v58 }
  0x5f   :  { %417 = vmatmul.mubr.f32.gmra.mrb[24].mxu0 %v68_v59 }
  0x60   :  { %2253 = vmatprep.mubr.msk.f32.mxu0 %vm243_vm0, %v71_v60 }
  0x63   :  { %422 = vmatmul.mubr.f32.gmra.mrb[26].mxu0 %v70_v61 }
  0x64   :  { %2254 = vmatprep.mubr.msk.f32.mxu0 %vm243_vm0, %v73_v62 }
  0x67   :  { %427 = vmatmul.mubr.f32.gmra.mrb[28].mxu0 %v72_v63 }
  0x68   :  { %2255 = vmatprep.mubr.msk.f32.mxu0 %vm243_vm0, %v75_v0 }
  0x6b   :  { %432 = vmatmul.mubr.f32.gmra.mrb[30].mxu0 %v74_v1 }
 0x102   :  { %v358_v28 = vpop.f32.mrb[0].mxu0 }
 0x103   :  { %v360_v29 = vpop.f32.mrb[1].mxu0 }
 0x104   :  { %v2522_v29 = vpop.f32.mrb[0].mxu1 }
 0x106   :  { %v363_v30 = vpop.f32.mrb[2].mxu0 }
 0x107   :  { %v437_v31 = vpack.c.bf16 %v363_v30, %v358_v28  ;;  %v365_v32 = vpop.f32.mrb[3].mxu0  ;;  %v2884_v28 = vld [vmem:[%s4041_s1 + $0x38] sm:$0xff]   ;;  %v559_v30 = vpop.f32.mrb[1].mxu1 }
 0x109   :  { %2544 = vmatprep.subr.bf16.mxu1 %v437_v31 }
 0x10a   :  { %v368_v33 = vpop.f32.mrb[4].mxu0  ;;  %2545 = vmatpush3.bf16.msra.mxu1 %v437_v31 }
 0x10b   :  { %v370_v34 = vpop.f32.mrb[5].mxu0 }
 0x10e   :  { %v373_v35 = vpop.f32.mrb[6].mxu0 }
 0x10f   :  { %v438_v36 = vpack.c.bf16 %v373_v35, %v368_v33  ;;  %v375_v37 = vpop.f32.mrb[7].mxu0 }
 0x111   :  { %2546 = vmatprep.subr.bf16.mxu1 %v438_v36 }
 0x112   :  { %v378_v38 = vpop.f32.mrb[8].mxu0  ;;  %2547 = vmatpush3.bf16.msra.mxu1 %v438_v36 }
 0x113   :  { %v380_v39 = vpop.f32.mrb[9].mxu0 }
 0x116   :  { %v383_v40 = vpop.f32.mrb[10].mxu0 }
 0x117   :  { %v439_v41 = vpack.c.bf16 %v383_v40, %v378_v38  ;;  %v385_v42 = vpop.f32.mrb[11].mxu0 }
 0x119   :  { %2548 = vmatprep.subr.bf16.mxu1 %v439_v41 }
 0x11a   :  { %v388_v43 = vpop.f32.mrb[12].mxu0  ;;  %2549 = vmatpush3.bf16.msra.mxu1 %v439_v41 }
 0x11b   :  { %v390_v44 = vpop.f32.mrb[13].mxu0 }
 0x11c   :  { %v118_v44 = vld [vmem:[%s4038_s4 + $0xd0] sm:$0xff] }
 0x11e   :  { %v393_v45 = vpop.f32.mrb[14].mxu0 }
 0x11f   :  { %v440_v46 = vpack.c.bf16 %v393_v45, %v388_v43  ;;  %v395_v47 = vpop.f32.mrb[15].mxu0  ;;  %v119_v45 = vld [vmem:[%s4038_s4 + $0xd8] sm:$0xff] }
 0x121   :  { %2550 = vmatprep.subr.bf16.mxu1 %v440_v46 }
 0x122   :  { %v398_v48 = vpop.f32.mrb[16].mxu0  ;;  %2551 = vmatpush3.bf16.msra.mxu1 %v440_v46  ;;  %v2825_v46 = vpack.c.bf16 %v119_v45, %v118_v44  ;;  %v156_v44 = vsel %vm146_vm1, %v3143_v8, 0.0  ;;  %v162_v45 = vsel %vm146_vm1, %v3157_v10, 0.0 }
 0x123   :  { %v400_v49 = vpop.f32.mrb[17].mxu0 }
 0x126   :  { %v403_v50 = vpop.f32.mrb[18].mxu0 }
 0x127   :  { %v441_v51 = vpack.c.bf16 %v403_v50, %v398_v48  ;;  %v405_v52 = vpop.f32.mrb[19].mxu0 }
 0x129   :  { %2552 = vmatprep.subr.bf16.mxu1 %v441_v51 }
 0x12a   :  { %v408_v53 = vpop.f32.mrb[20].mxu0  ;;  %2553 = vmatpush3.bf16.msra.mxu1 %v441_v51 }
 0x12b   :  { %v410_v54 = vpop.f32.mrb[21].mxu0 }
 0x12e   :  { %v413_v55 = vpop.f32.mrb[22].mxu0 }
 0x12f   :  { %v442_v56 = vpack.c.bf16 %v413_v55, %v408_v53  ;;  %v415_v57 = vpop.f32.mrb[23].mxu0 }
 0x130   :  { %v121_v57 = vld [vmem:[%s4038_s4 + $0xe8] sm:$0xff] }
 0x131   :  { %2554 = vmatprep.subr.bf16.mxu1 %v442_v56 }
 0x132   :  { %v418_v58 = vpop.f32.mrb[24].mxu0  ;;  %2555 = vmatpush3.bf16.msra.mxu1 %v442_v56  ;;  %v120_v56 = vld [vmem:[%s4038_s4 + $0xe0] sm:$0xff] }
 0x133   :  { %v420_v59 = vpop.f32.mrb[25].mxu0 }
 0x136   :  { %v423_v60 = vpop.f32.mrb[26].mxu0 }
 0x137   :  { %v443_v61 = vpack.c.bf16 %v423_v60, %v418_v58  ;;  %v425_v62 = vpop.f32.mrb[27].mxu0 }
 0x139   :  { %2556 = vmatprep.subr.bf16.mxu1 %v443_v61 }
 0x13a   :  { %v428_v63 = vpop.f32.mrb[28].mxu0  ;;  %2557 = vmatpush3.bf16.msra.mxu1 %v443_v61 }
 0x13b   :  { %v430_v0 = vpop.f32.mrb[29].mxu0 }
 0x13c   :  { %v2829_v0 = vpack.c.bf16 %v121_v57, %v120_v56  ;;  %v189_v56 = vsel %vm146_vm1, %v3220_v19, 0.0 }
 0x13e   :  { %v433_v1 = vpop.f32.mrb[30].mxu0 }
 0x13f   :  { %v444_v2 = vpack.c.bf16 %v433_v1, %v428_v63  ;;  %v435_v3 = vpop.f32.mrb[31].mxu0 }
 0x140   :  { %v123_v3 = vld [vmem:[%s4038_s4 + $0xf8] sm:$0xff] }
 0x141   :  { %2558 = vmatprep.subr.bf16.mxu1 %v444_v2 }
 0x142   :  { %2559 = vmatpush3.bf16.msra.mxu1 %v444_v2  ;;  %v122_v2 = vld [vmem:[%s4038_s4 + $0xf0] sm:$0xff] }
 0x143   :  { %2869 = vmatprep.subr.bf16.mxu1 %v3243_v24 }
 0x145   :  { %2561 = vmatmul.mubr.bf16.vlgmr.msra.gmra.mrb[16].mxu1 %v2878_v4  ;;  %v2833_v4 = vpack.c.bf16 %v123_v3, %v122_v2 }
 0x146   :  { %2564 = vmatprep.mubr.bf16.mxu1 %v2879_v22  ;;  %2871 = vmatpush3.bf16.msra.mxu1 %v3243_v24  ;;  %v2883_v24 = vld [vmem:[%s4041_s1 + $0x30] sm:$0xff]  }
 0x147   :  { %2870 = vmatprep.subr.bf16.mxu1 %v3253_v27 }
 0x14a   :  { %2872 = vmatpush3.bf16.msra.mxu1 %v3253_v27  ;;  %v2525_v27 = vpop.f32.mrb[2].mxu1 }
 0x14b   :  { %v569_v31 = vpop.f32.mrb[3].mxu1  ;;  %2826 = vmatprep.subr.bf16.mxu1 %v2825_v46 }
 0x14c   :  { %v2528_v32 = vpop.f32.mrb[4].mxu1 }
 0x14d   :  { %2565 = vmatmul.mubr.bf16.gmra.mrb[20].mxu1 %v2880_v23  ;;  %v579_v33 = vpop.f32.mrb[5].mxu1 }
 0x14e   :  { %2568 = vmatprep.mubr.bf16.mxu1 %v2881_v25  ;;  %v2531_v34 = vpop.f32.mrb[6].mxu1 }
 0x14f   :  { %v589_v35 = vpop.f32.mrb[7].mxu1 }
 0x150   :  { %v2534_v36 = vpop.f32.mrb[8].mxu1 }
 0x151   :  { %v599_v37 = vpop.f32.mrb[9].mxu1 }
 0x152   :  { %v2537_v38 = vpop.f32.mrb[10].mxu1 }
 0x153   :  { %v609_v39 = vpop.f32.mrb[11].mxu1 }
 0x154   :  { %v3282_v40 = vpop.f32.mrb[12].mxu1 }
 0x155   :  { %2569 = vmatmul.mubr.bf16.gmra.mrb[24].mxu1 %v2882_v26  ;;  %v619_v41 = vpop.f32.mrb[13].mxu1 }
 0x156   :  { %2572 = vmatprep.mubr.bf16.mxu1 %v2883_v24  ;;  %v2543_v42 = vpop.f32.mrb[14].mxu1 }
 0x157   :  { %v629_v43 = vpop.f32.mrb[15].mxu1 }
 0x15d   :  { %2573 = vmatmul.mubr.bf16.gmra.mrb[28].mxu1 %v2884_v28 }
 0x218   :  { %v2562_v47 = vpop.f32.mrb[16].mxu1 }
 0x219   :  { %v729_v48 = vadd.f32 %v2562_v47, %v569_v31  ;;  %v720_v49 = vpop.f32.mrb[17].mxu1  ;;  %v165_v47 = vsel %vm146_vm1, %v3164_v11, 0.0 }
 0x21a   :  { %v721_v50 = vadd.f32 %v720_v49, %v559_v30  ;;  %v2563_v51 = vpop.f32.mrb[18].mxu1  ;;  %v171_v49 = vsel %vm146_vm1, %v3178_v13, 0.0 }
 0x21b   :  { %v732_v52 = vadd.f32 %v2563_v51, %v2525_v27  ;;  %v723_v53 = vpop.f32.mrb[19].mxu1  ;;  %v177_v51 = vsel %vm146_vm1, %v3192_v15, 0.0 }
 0x21c   :  { %v724_v54 = vadd.f32 %v2522_v29, %v723_v53  ;;  %2584 = vmatprep.mubr.msk.f32.mxu0 %vm787_vm2, %v721_v50  ;;  %v180_v50 = vsel %vm146_vm1, %v3199_v16, 0.0  ;;  %v183_v53 = vsel %vm146_vm1, %v3206_v17, 0.0 }
 0x21e   :  { %2585 = vmatmul.mubr.msk.f32.vlgmr.msra.gmra.mrb[32].mxu0 %vm787_vm2, %v724_v54  ;;  %v25_v54 = vstv %s24_s10 }
 0x21f   :  { %2587 = vmatprep.mubr.msk.f32.mxu0 %vm787_vm2, %v729_v48  ;;  %v174_v48 = vsel %vm146_vm1, %v3185_v14, 0.0  ;;  %2885 = vrcp.f32 %v25_v54 }
 0x220   :  { %v2566_v55 = vpop.f32.mrb[20].mxu1 }
 0x221   :  { %v745_v58 = vadd.f32 %v2566_v55, %v589_v35  ;;  %v736_v59 = vpop.f32.mrb[21].mxu1  ;;  %v192_v55 = vsel %vm146_vm1, %v3227_v20, 0.0 }
 0x222   :  { %v737_v60 = vadd.f32 %v736_v59, %v579_v33  ;;  %v2567_v61 = vpop.f32.mrb[22].mxu1  ;;  %2588 = vmatmul.mubr.msk.f32.gmra.mrb[34].mxu0 %vm787_vm2, %v732_v52  ;;  %v186_v52 = vsel %vm146_vm1, %v3213_v18, 0.0 }
 0x223   :  { %v748_v62 = vadd.f32 %v2567_v61, %v2531_v34  ;;  %v739_v63 = vpop.f32.mrb[23].mxu1  ;;  %2593 = vmatprep.mubr.msk.f32.mxu1 %vm787_vm2, %v745_v58  ;;  %v783_v58 = vlaneseq  ;;  %v144_v61 = vld [vmem:[%s4042_s5 + $0x40] sm:$0xff] }
 0x224   :  { %v740_v1 = vadd.f32 %v2528_v32, %v739_v63  ;;  %2590 = vmatprep.mubr.msk.f32.mxu0 %vm787_vm2, %v737_v60 }
 0x225   :  { %2594 = vmatmul.mubr.msk.f32.vlgmr.msra.gmra.mrb[32].mxu1 %vm787_vm2, %v748_v62  ;;  %v784_v59 = vshrl.u32 %v783_v58, 7 }
 0x226   :  { %2591 = vmatmul.mubr.msk.f32.gmra.mrb[36].mxu0 %vm787_vm2, %v740_v1  ;;  %2828 = vmatpush3.bf16.msra.mxu1 %v2825_v46  ;;  %v159_v46 = vsel %vm146_vm1, %v3150_v9, 0.0 }
 0x227   :  { %2830 = vmatprep.subr.bf16.mxu1 %v2829_v0  ;;  %2652 = vmatprep.mubr.msk.f32.mxu0 %vm146_vm1, %v3122_v5  ;;  %v3362_v60 = vsub.s32 0, %v784_v59 }
 0x228   :  { %v2570_v22 = vpop.f32.mrb[24].mxu1 }
 0x229   :  { %v761_v23 = vadd.f32 %v2570_v22, %v609_v39  ;;  %v752_v25 = vpop.f32.mrb[25].mxu1  ;;  %v125_v39 = vld [vmem:[%s4038_s4 + $0x108] sm:$0xff]  ;;  %v2886_v57 = vpop.eup %2885  ;;  %v786_v62 = vrot.slane %v144_v61, %v3362_v60 }
 0x22a   :  { %v753_v26 = vadd.f32 %v752_v25, %v599_v37  ;;  %v2571_v24 = vpop.f32.mrb[26].mxu1  ;;  %2832 = vmatpush3.bf16.msra.mxu1 %v2829_v0  ;;  %2873 = vpush %v2886_v57 }
 0x22b   :  { %v764_v28 = vadd.f32 %v2571_v24, %v2537_v38  ;;  %v755_v29 = vpop.f32.mrb[27].mxu1  ;;  %2834 = vmatprep.subr.bf16.mxu1 %v2833_v4 }
 0x22c   :  { %v756_v30 = vadd.f32 %v2534_v36, %v755_v29  ;;  %2596 = vmatprep.mubr.msk.f32.mxu1 %vm787_vm2, %v753_v26  ;;  %v124_v36 = vld [vmem:[%s4038_s4 + $0x100] sm:$0xff] }
 0x22e   :  { %2597 = vmatmul.mubr.msk.f32.gmra.mrb[34].mxu1 %vm787_vm2, %v756_v30 }
 0x22f   :  { %2599 = vmatprep.mubr.msk.f32.mxu1 %vm787_vm2, %v761_v23  ;;  %2836 = vmatpush3.bf16.msra.mxu1 %v2833_v4 }
 0x230   :  { %v2574_v27 = vpop.f32.mrb[28].mxu1 }
 0x231   :  { %v777_v31 = vadd.f32 %v2574_v27, %v629_v43  ;;  %v768_v32 = vpop.f32.mrb[29].mxu1  ;;  %v150_v43 = vsel %vm146_vm1, %v3129_v6, 0.0 }
 0x232   :  { %v769_v33 = vadd.f32 %v768_v32, %v619_v41  ;;  %v2575_v34 = vpop.f32.mrb[30].mxu1  ;;  %2600 = vmatmul.mubr.msk.f32.gmra.mrb[36].mxu1 %vm787_vm2, %v764_v28  ;;  %v2837_v41 = vpack.c.bf16 %v125_v39, %v124_v36 }
 0x233   :  { %v780_v35 = vadd.f32 %v2575_v34, %v2543_v42  ;;  %v771_v37 = vpop.f32.mrb[31].mxu1  ;;  %v153_v42 = vsel %vm146_vm1, %v3136_v7, 0.0 }
 0x234   :  { %v772_v38 = vadd.f32 %v3282_v40, %v771_v37  ;;  %2602 = vmatprep.mubr.msk.f32.mxu1 %vm787_vm2, %v769_v33  ;;  %2838 = vmatprep.subr.bf16.mxu1 %v2837_v41  ;;  %v147_v40 = vsel %vm146_vm1, %v3122_v5, 0.0  ;;  %v168_v5 = vsel %vm146_vm1, %v3171_v12, 0.0 }
 0x235   :  { %2840 = vmatpush3.bf16.msra.mxu1 %v2837_v41  ;;  %148 = vadd.xlane.f32.xlu0 %v147_v40 }
 0x236   :  { %2603 = vmatmul.mubr.msk.f32.gmra.mrb[38].mxu1 %vm787_vm2, %v772_v38  ;;  %154 = vadd.xlane.f32.xlu1 %v153_v42 }
 0x237   :  { %2605 = vmatprep.mubr.msk.f32.mxu1 %vm787_vm2, %v777_v31 }
 0x239   :  { %151 = vadd.xlane.f32.xlu0 %v150_v43 }
 0x23a   :  { %2606 = vmatmul.mubr.msk.f32.gmra.mrb[40].mxu1 %vm787_vm2, %v780_v35  ;;  %157 = vadd.xlane.f32.xlu1 %v156_v44 }
 0x23d   :  { %160 = vadd.xlane.f32.xlu0 %v159_v46 }
 0x23e   :  { %163 = vadd.xlane.f32.xlu1 %v162_v45 }
 0x241   :  { %166 = vadd.xlane.f32.xlu0 %v165_v47 }
 0x242   :  { %169 = vadd.xlane.f32.xlu1 %v168_v5 }
 0x245   :  { %172 = vadd.xlane.f32.xlu0 %v171_v49 }
 0x246   :  { %175 = vadd.xlane.f32.xlu1 %v174_v48 }
 0x249   :  { %178 = vadd.xlane.f32.xlu0 %v177_v51 }
 0x24a   :  { %181 = vadd.xlane.f32.xlu1 %v180_v50 }
 0x24d   :  { %184 = vadd.xlane.f32.xlu0 %v183_v53 }
 0x24e   :  { %187 = vadd.xlane.f32.xlu1 %v186_v52 }
 0x251   :  { %190 = vadd.xlane.f32.xlu0 %v189_v56 }
 0x252   :  { %193 = vadd.xlane.f32.xlu1 %v192_v55 }
 0x25b   :  { %s2874_s17 = spop %2873 }
 0x2f1   :  { %v2586_v63 = vpop.f32.mrb[32].mxu0 }
 0x2f2   :  { %v908_v0 = vadd.f32 %v2586_v63, %v786_v62  ;;  %v902_v1 = vpop.f32.mrb[33].mxu0 }
 0x2f3   :  { %v903_v2 = vadd.f32 %v902_v1, %v786_v62  ;;  %v155_v1 = vpop.xlane.xlu1 %154 }
 0x2f4   :  { %v982_v22 = vmax.f32 %v908_v0, 0.0  ;;  %vm197_vm7 = vcmp.gt.f32.partialorder %v155_v1, 0.0 }
 0x2f5   :  { %v981_v3 = vmax.f32 %v903_v2, 0.0  ;;  %v2589_v4 = vpop.f32.mrb[34].mxu0  ;;  %v149_v2 = vpop.xlane.xlu0 %148 }
 0x2f6   :  { %v918_v23 = vadd.f32 %v2589_v4, %v786_v62  ;;  %v912_v25 = vpop.f32.mrb[35].mxu0  ;;  %vm195_vm5 = vcmp.gt.f32.partialorder %v149_v2, 0.0 }
 0x2f7   :  { %v913_v26 = vadd.f32 %v912_v25, %v786_v62  ;;  %2624 = vmatprep.mubr.msk.f32.mxu1 %vm1001_vm3, %v981_v3  ;;  %v158_v3 = vpop.xlane.xlu1 %157 }
 0x2f8   :  { %v2595_v24 = vpop.f32.mrb[32].mxu1  ;;  %2625 = vmatmul.mubr.msk.f32.vlgmr.msra.gmra.mrb[42].mxu1 %vm1001_vm3, %v982_v22  ;;  %v984_v27 = vmax.f32 %v918_v23, 0.0  ;;  %vm198_vm6 = vcmp.gt.f32.partialorder %v158_v3, 0.0 }
 0x2f9   :  { %v983_v28 = vmax.f32 %v913_v26, 0.0  ;;  %v2592_v29 = vpop.f32.mrb[36].mxu0  ;;  %v932_v30 = vpop.f32.mrb[33].mxu1  ;;  %v938_v37 = vadd.f32 %v2595_v24, %v786_v62 }
 0x2fa   :  { %v928_v31 = vadd.f32 %v2592_v29, %v786_v62  ;;  %v922_v32 = vpop.f32.mrb[37].mxu0  ;;  %v933_v33 = vadd.f32 %v932_v30, %v786_v62  ;;  %v152_v4 = vpop.xlane.xlu0 %151 }
 0x2fb   :  { %v923_v34 = vadd.f32 %v922_v32, %v786_v62  ;;  %2627 = vmatprep.mubr.msk.f32.mxu1 %vm1001_vm3, %v983_v28  ;;  %v988_v41 = vmax.f32 %v938_v37, 0.0  ;;  %v164_v22 = vpop.xlane.xlu1 %163  ;;  %vm196_vm4 = vcmp.gt.f32.partialorder %v152_v4, 0.0  ;;  %v2899_v28 = vmov 0.0  }
 0x2fc   :  { %2628 = vmatmul.mubr.msk.f32.gmra.mrb[44].mxu1 %vm1001_vm3, %v984_v27  ;;  %v986_v38 = vmax.f32 %v928_v31, 0.0  ;;  %v987_v36 = vmax.f32 %v933_v33, 0.0  ;;  %v3401_v32 = vsel %vm195_vm5, 1.0, %v2899_v28  ;;  %vm200_vm8 = vcmp.gt.f32.partialorder %v164_v22, 0.0 }
 0x2fd   :  { %v985_v35 = vmax.f32 %v923_v34, 0.0 }
 0x2fe   :  { %v161_v23 = vpop.xlane.xlu0 %160 }
 0x2ff   :  { %2630 = vmatprep.mubr.msk.f32.mxu1 %vm1001_vm3, %v985_v35  ;;  %v170_v26 = vpop.xlane.xlu1 %169  ;;  %vm199_vm9 = vcmp.gt.f32.partialorder %v161_v23, 0.0 }
 0x300   :  { %2631 = vmatmul.mubr.msk.f32.gmra.mrb[46].mxu1 %vm1001_vm3, %v986_v38  ;;  %vm202_vm10 = vcmp.gt.f32.partialorder %v170_v26, 0.0 }
 0x301   :  { %v2598_v39 = vpop.f32.mrb[34].mxu1  ;;  %2633 = vmatprep.mubr.msk.f32.mxu1 %vm1001_vm3, %v987_v36  ;;  %v3409_v36 = vsel %vm198_vm6, 1.0, %v2899_v28 }
 0x302   :  { %v948_v40 = vadd.f32 %v2598_v39, %v786_v62  ;;  %v942_v42 = vpop.f32.mrb[35].mxu1  ;;  %v167_v24 = vpop.xlane.xlu0 %166 }
 0x303   :  { %v943_v43 = vadd.f32 %v942_v42, %v786_v62  ;;  %v176_v37 = vpop.xlane.xlu1 %175  ;;  %vm201_vm11 = vcmp.gt.f32.partialorder %v167_v24, 0.0 }
 0x304   :  { %2634 = vmatmul.mubr.msk.f32.gmra.mrb[48].mxu1 %vm1001_vm3, %v988_v41  ;;  %v990_v46 = vmax.f32 %v948_v40, 0.0  ;;  %v3450_v2 = vsel %vm201_vm11, 1.0, %v2899_v28  ;;  %vm204_vm12 = vcmp.gt.f32.partialorder %v176_v37, 0.0 }
 0x305   :  { %v989_v44 = vmax.f32 %v943_v43, 0.0  ;;  %v2601_v45 = vpop.f32.mrb[36].mxu1 }
 0x306   :  { %v958_v5 = vadd.f32 %v2601_v45, %v786_v62  ;;  %v952_v47 = vpop.f32.mrb[37].mxu1  ;;  %v173_v40 = vpop.xlane.xlu0 %172 }
 0x307   :  { %v953_v48 = vadd.f32 %v952_v47, %v786_v62  ;;  %2636 = vmatprep.mubr.msk.f32.mxu1 %vm1001_vm3, %v989_v44  ;;  %v3419_v44 = vsel %vm197_vm7, 1.0, %v2899_v28  ;;  %vm203_vm13 = vcmp.gt.f32.partialorder %v173_v40, 0.0 }
 0x308   :  { %2637 = vmatmul.mubr.msk.f32.gmra.mrb[50].mxu1 %vm1001_vm3, %v990_v46  ;;  %v992_v51 = vmax.f32 %v958_v5, 0.0  ;;  %v3468_v37 = vsel %vm203_vm13, 1.0, %v2899_v28 }
 0x309   :  { %v991_v49 = vmax.f32 %v953_v48, 0.0  ;;  %v2604_v50 = vpop.f32.mrb[38].mxu1  ;;  %v3426_v48 = vsel %vm200_vm8, 1.0, %v2899_v28 }
 0x30a   :  { %v968_v52 = vadd.f32 %v2604_v50, %v786_v62  ;;  %v962_v53 = vpop.f32.mrb[39].mxu1  ;;  %v3432_v50 = vsel %vm199_vm9, 1.0, %v2899_v28 }
 0x30b   :  { %v963_v54 = vadd.f32 %v962_v53, %v786_v62  ;;  %2639 = vmatprep.mubr.msk.f32.mxu1 %vm1001_vm3, %v991_v49 }
 0x30c   :  { %2640 = vmatmul.mubr.msk.f32.gmra.mrb[52].mxu1 %vm1001_vm3, %v992_v51  ;;  %v994_v57 = vmax.f32 %v968_v52, 0.0 }
 0x30d   :  { %v993_v55 = vmax.f32 %v963_v54, 0.0  ;;  %v2607_v56 = vpop.f32.mrb[40].mxu1  ;;  %v182_v54 = vpop.xlane.xlu1 %181 }
 0x30e   :  { %v978_v58 = vadd.f32 %v2607_v56, %v786_v62  ;;  %v972_v59 = vpop.f32.mrb[41].mxu1  ;;  %v179_v56 = vpop.xlane.xlu0 %178  ;;  %vm206_vm14 = vcmp.gt.f32.partialorder %v182_v54, 0.0 }
 0x30f   :  { %v973_v61 = vadd.f32 %v972_v59, %v786_v62  ;;  %2642 = vmatprep.mubr.msk.f32.mxu1 %vm1001_vm3, %v993_v55  ;;  %v134_v62 = vld [vmem:[%s4038_s4 + $0x150] sm:$0xff]  ;;  %vm205_vm15 = vcmp.gt.f32.partialorder %v179_v56, 0.0 }
 0x310   :  { %2643 = vmatmul.mubr.msk.f32.gmra.mrb[54].mxu1 %vm1001_vm3, %v994_v57  ;;  %v996_v0 = vmax.f32 %v978_v58, 0.0  ;;  %v3389_v25 = vrot.slane %v134_v62, %v3362_v60 }
 0x311   :  { %v995_v63 = vmax.f32 %v973_v61, 0.0 }
 0x313   :  { %2645 = vmatprep.mubr.msk.f32.mxu1 %vm1001_vm3, %v995_v63 }
 0x314   :  { %2646 = vmatmul.mubr.msk.f32.gmra.mrb[56].mxu1 %vm1001_vm3, %v996_v0  ;;  %v3444_v0 = vsel %vm202_vm10, 1.0, %v2899_v28 }
 0x315   :  { %2692 = vmatprep.mubr.bf16.mxu1 %v3234_v21  ;;  %v3392_v21 = vsel %vm196_vm4, 1.0, %v2899_v28 }
 0x3cb   :  { %v2626_v29 = vpop.f32.mrb[42].mxu1 }
 0x3cc   :  { %v3395_v30 = vadd.f32 %v2626_v29, %v3389_v25  ;;  %v1116_v27 = vpop.f32.mrb[43].mxu1 }
 0x3cd   :  { %v3398_v31 = vadd.f32 %v1116_v27, %v3389_v25  ;;  %v188_v27 = vpop.xlane.xlu1 %187 }
 0x3ce   :  { %v1196_v33 = vmul.f32 %v3392_v21, %v3395_v30  ;;  %vm208_vm0 = vcmp.gt.f32.partialorder %v188_v27, 0.0 }
 0x3cf   :  { %v1195_v34 = vmul.f32 %v3401_v32, %v3398_v31  ;;  %v2629_v35 = vpop.f32.mrb[44].mxu1 }
 0x3d0   :  { %v1212_v38 = vsel %vm787_vm2, %v1196_v33, 0.0  ;;  %v3412_v39 = vadd.f32 %v2629_v35, %v3389_v25  ;;  %v1126_v41 = vpop.f32.mrb[45].mxu1 }
 0x3d1   :  { %v1211_v42 = vsel %vm787_vm2, %v1195_v34, 0.0  ;;  %v3416_v43 = vadd.f32 %v1126_v41, %v3389_v25  ;;  %v3462_v34 = vsel %vm204_vm12, 1.0, %v2899_v28  ;;  %v185_v41 = vpop.xlane.xlu0 %184 }
 0x3d2   :  { %v1213_v45 = vadd.f32 %v1212_v38, %v1211_v42  ;;  %v1198_v46 = vmul.f32 %v3409_v36, %v3412_v39  ;;  %vm207_vm4 = vcmp.gt.f32.partialorder %v185_v41, 0.0 }
 0x3d3   :  { %v1197_v5 = vmul.f32 %v3419_v44, %v3416_v43  ;;  %v2632_v47 = vpop.f32.mrb[46].mxu1  ;;  %v3510_v41 = vsel %vm207_vm4, 1.0, %v2899_v28 }
 0x3d4   :  { %v3429_v49 = vadd.f32 %v2632_v47, %v3389_v25  ;;  %v1136_v51 = vpop.f32.mrb[47].mxu1  ;;  %v1216_v57 = vsel %vm787_vm2, %v1198_v46, 0.0  ;;  %v116_v46 = vld [vmem:[%s4038_s4 + $0xc0] sm:$0xff] }
 0x3d5   :  { %v1214_v52 = vsel %vm787_vm2, %v1197_v5, 0.0  ;;  %v3436_v53 = vadd.f32 %v1136_v51, %v3389_v25  ;;  %v117_v5 = vld [vmem:[%s4038_s4 + $0xc8] sm:$0xff] }
 0x3d6   :  { %v1215_v55 = vadd.f32 %v1214_v52, %v1213_v45  ;;  %v1200_v58 = vmul.f32 %v3426_v48, %v3429_v49  ;;  %v2841_v54 = vpack.c.bf16 %v117_v5, %v116_v46 }
 0x3d7   :  { %v1199_v59 = vmul.f32 %v3432_v50, %v3436_v53  ;;  %v2635_v61 = vpop.f32.mrb[48].mxu1 }
 0x3d8   :  { %v1217_v63 = vadd.f32 %v1216_v57, %v1215_v55  ;;  %v3447_v1 = vadd.f32 %v2635_v61, %v3389_v25  ;;  %v1146_v3 = vpop.f32.mrb[49].mxu1  ;;  %v1220_v62 = vsel %vm787_vm2, %v1200_v58, 0.0  ;;  %v3486_v57 = vsel %vm206_vm14, 1.0, %v2899_v28  ;;  %2842 = vmatprep.subr.bf16.mxu0 %v2841_v54 }
 0x3d9   :  { %v1218_v4 = vsel %vm787_vm2, %v1199_v59, 0.0  ;;  %v3454_v22 = vadd.f32 %v1146_v3, %v3389_v25  ;;  %v3492_v59 = vsel %vm205_vm15, 1.0, %v2899_v28  ;;  %2844 = vmatpush3.bf16.msra.mxu0 %v2841_v54 }
 0x3da   :  { %v1219_v23 = vadd.f32 %v1218_v4, %v1217_v63  ;;  %v1202_v26 = vmul.f32 %v3444_v0, %v3447_v1 }
 0x3db   :  { %v1201_v24 = vmul.f32 %v3450_v2, %v3454_v22  ;;  %v2638_v29 = vpop.f32.mrb[50].mxu1 }
 0x3dc   :  { %v1221_v33 = vadd.f32 %v1220_v62, %v1219_v23  ;;  %v3465_v35 = vadd.f32 %v2638_v29, %v3389_v25  ;;  %v1156_v38 = vpop.f32.mrb[51].mxu1  ;;  %v1224_v47 = vsel %vm787_vm2, %v1202_v26, 0.0  ;;  %v194_v23 = vpop.xlane.xlu1 %193  ;;  %2653 = vmatmul.mubr.msk.f32.vlgmr.msra.gmra.mrb[38].mxu0 %vm146_vm1, %v3129_v6 }
 0x3dd   :  { %v1222_v40 = vsel %vm787_vm2, %v1201_v24, 0.0  ;;  %v3472_v42 = vadd.f32 %v1156_v38, %v3389_v25  ;;  %v191_v62 = vpop.xlane.xlu0 %190  ;;  %vm210_vm5 = vcmp.gt.f32.partialorder %v194_v23, 0.0  ;;  %2655 = vmatprep.mubr.msk.f32.mxu0 %vm146_vm1, %v3136_v7 }
 0x3de   :  { %v1223_v45 = vadd.f32 %v1222_v40, %v1221_v33  ;;  %v1204_v51 = vmul.f32 %v3462_v34, %v3465_v35  ;;  %v3504_v40 = vsel %vm208_vm0, 1.0, %v2899_v28  ;;  %vm209_vm6 = vcmp.gt.f32.partialorder %v191_v62, 0.0 }
 0x3df   :  { %v1203_v52 = vmul.f32 %v3468_v37, %v3472_v42  ;;  %v2641_v55 = vpop.f32.mrb[52].mxu1  ;;  %v3527_v6 = vsel %vm209_vm6, 1.0, %v2899_v28 }
 0x3e0   :  { %v1225_v56 = vadd.f32 %v1224_v47, %v1223_v45  ;;  %v3489_v58 = vadd.f32 %v2641_v55, %v3389_v25  ;;  %v1166_v61 = vpop.f32.mrb[53].mxu1  ;;  %v1228_v26 = vsel %vm787_vm2, %v1204_v51, 0.0  ;;  %2656 = vmatmul.mubr.msk.f32.gmra.mrb[40].mxu0 %vm146_vm1, %v3143_v8 }
 0x3e1   :  { %v1226_v63 = vsel %vm787_vm2, %v1203_v52, 0.0  ;;  %v3496_v3 = vadd.f32 %v1166_v61, %v3389_v25  ;;  %v3523_v61 = vsel %vm210_vm5, 1.0, %v2899_v28  ;;  %2658 = vmatprep.mubr.msk.f32.mxu0 %vm146_vm1, %v3150_v9 }
 0x3e2   :  { %v1227_v4 = vadd.f32 %v1226_v63, %v1225_v56  ;;  %v1206_v24 = vmul.f32 %v3486_v57, %v3489_v58 }
 0x3e3   :  { %v1205_v29 = vmul.f32 %v3492_v59, %v3496_v3  ;;  %v2644_v33 = vpop.f32.mrb[54].mxu1 }
 0x3e4   :  { %v1229_v38 = vadd.f32 %v1228_v26, %v1227_v4  ;;  %v3507_v27 = vadd.f32 %v2644_v33, %v3389_v25  ;;  %v1176_v45 = vpop.f32.mrb[55].mxu1  ;;  %v1232_v51 = vsel %vm787_vm2, %v1206_v24, 0.0  ;;  %2659 = vmatmul.mubr.msk.f32.gmra.mrb[42].mxu0 %vm146_vm1, %v3157_v10 }
 0x3e5   :  { %v1230_v46 = vsel %vm787_vm2, %v1205_v29, 0.0  ;;  %v1177_v5 = vadd.f32 %v1176_v45, %v3389_v25  ;;  %2661 = vmatprep.mubr.msk.f32.mxu0 %vm146_vm1, %v3164_v11 }
 0x3e6   :  { %v1231_v47 = vadd.f32 %v1230_v46, %v1229_v38  ;;  %v1208_v52 = vmul.f32 %v3504_v40, %v3507_v27 }
 0x3e7   :  { %v1207_v55 = vmul.f32 %v3510_v41, %v1177_v5  ;;  %v2647_v54 = vpop.f32.mrb[56].mxu1 }
 0x3e8   :  { %v1233_v56 = vadd.f32 %v1232_v51, %v1231_v47  ;;  %v1192_v63 = vadd.f32 %v2647_v54, %v3389_v25  ;;  %v1186_v4 = vpop.f32.mrb[57].mxu1  ;;  %v1236_v26 = vsel %vm787_vm2, %v1208_v52, 0.0  ;;  %2662 = vmatmul.mubr.msk.f32.gmra.mrb[44].mxu0 %vm146_vm1, %v3171_v12  ;;  %v3556_v12 = vstv %s2874_s17 }
 0x3e9   :  { %v1234_v7 = vsel %vm787_vm2, %v1207_v55, 0.0  ;;  %v1187_v23 = vadd.f32 %v1186_v4, %v3389_v25  ;;  %2664 = vmatprep.mubr.msk.f32.mxu0 %vm146_vm1, %v3178_v13 }
 0x3ea   :  { %v1235_v62 = vadd.f32 %v1234_v7, %v1233_v56  ;;  %v1210_v24 = vmul.f32 %v3523_v61, %v1192_v63  ;;  %v140_v7 = vld [vmem:[%s4042_s5 + $0x20] sm:$0xff] }
 0x3eb   :  { %v1209_v29 = vmul.f32 %v3527_v6, %v1187_v23 }
 0x3ec   :  { %v1237_v28 = vadd.f32 %v1236_v26, %v1235_v62  ;;  %v1240_v8 = vsel %vm787_vm2, %v1210_v24, 0.0  ;;  %2665 = vmatmul.mubr.msk.f32.gmra.mrb[46].mxu0 %vm146_vm1, %v3185_v14  ;;  %v141_v62 = vld [vmem:[%s4042_s5 + $0x28] sm:$0xff]  ;;  %v142_v26 = vld [vmem:[%s4042_s5 + $0x30] sm:$0xff]  ;;  %v143_v24 = vld [vmem:[%s4042_s5 + $0x38] sm:$0xff] }
 0x3ed   :  { %v1238_v33 = vsel %vm787_vm2, %v1209_v29, 0.0  ;;  %2667 = vmatprep.mubr.msk.f32.mxu0 %vm146_vm1, %v3192_v15 }
 0x3ee   :  { %v1239_v25 = vadd.f32 %v1238_v33, %v1237_v28 }
 0x3f0   :  { %v1241_v38 = vadd.f32 %v1240_v8, %v1239_v25  ;;  %2668 = vmatmul.mubr.msk.f32.gmra.mrb[48].mxu0 %vm146_vm1, %v3199_v16 }
 0x3f1   :  { %2670 = vmatprep.mubr.msk.f32.mxu0 %vm146_vm1, %v3206_v17 }
 0x3f2   :  { %v1242_v9 = vrot.slane %v1241_v38, 4 }
 0x3f4   :  { %v1243_v45 = vadd.f32 %v1242_v9, %v1241_v38  ;;  %2671 = vmatmul.mubr.msk.f32.gmra.mrb[50].mxu0 %vm146_vm1, %v3213_v18 }
 0x3f5   :  { %2673 = vmatprep.mubr.msk.f32.mxu0 %vm146_vm1, %v3220_v19 }
 0x3f6   :  { %v1244_v46 = vrot.slane %v1243_v45, 2 }
 0x3f8   :  { %v1245_v10 = vadd.f32 %v1244_v46, %v1243_v45  ;;  %2674 = vmatmul.mubr.msk.f32.gmra.mrb[52].mxu0 %vm146_vm1, %v3227_v20  ;;  %v2845_v45 = vpack.c.bf16 %v141_v62, %v140_v7  ;;  %v2849_v46 = vpack.c.bf16 %v143_v24, %v142_v26 }
 0x3fa   :  { %v1246_v11 = vrot.slane %v1245_v10, 1  ;;  %2846 = vmatprep.subr.bf16.mxu0 %v2845_v45 }
 0x3fb   :  { %2848 = vmatpush3.bf16.msra.mxu0 %v2845_v45 }
 0x3fc   :  { %v1247_v13 = vadd.f32 %v1246_v11, %v1245_v10  ;;  %2850 = vmatprep.subr.bf16.mxu0 %v2849_v46 }
 0x3fe   :  { %v1249_v14 = vmul.f32 %v3556_v12, %v1247_v13 }
 0x3ff   :  { %2852 = vmatpush3.bf16.msra.mxu0 %v2849_v46 }
 0x400   :  { %v3564_v15 = vsub.f32 %v3398_v31, %v1249_v14  ;;  %v3567_v16 = vsub.f32 %v3395_v30, %v1249_v14  ;;  %v3570_v47 = vsub.f32 %v3416_v43, %v1249_v14  ;;  %v3573_v17 = vsub.f32 %v3412_v39, %v1249_v14 }
 0x401   :  { %v3576_v51 = vsub.f32 %v3436_v53, %v1249_v14  ;;  %v3579_v18 = vsub.f32 %v3429_v49, %v1249_v14  ;;  %v3582_v19 = vsub.f32 %v3454_v22, %v1249_v14  ;;  %v3585_v31 = vsub.f32 %v3447_v1, %v1249_v14 }
 0x402   :  { %v3590_v30 = vsub.f32 %v3472_v42, %v1249_v14  ;;  %v3593_v39 = vsub.f32 %v3465_v35, %v1249_v14  ;;  %v3596_v43 = vsub.f32 %v3496_v3, %v1249_v14  ;;  %v3599_v49 = vsub.f32 %v3489_v58, %v1249_v14 }
 0x403   :  { %v3601_v53 = vsub.f32 %v1177_v5, %v1249_v14  ;;  %v3604_v1 = vsub.f32 %v3507_v27, %v1249_v14  ;;  %v3606_v22 = vsub.f32 %v1187_v23, %v1249_v14  ;;  %v3608_v20 = vsub.f32 %v1192_v63, %v1249_v14 }
 0x404   :  { %v1266_v42 = vmul.f32 %v3401_v32, %v3564_v15  ;;  %v1267_v35 = vmul.f32 %v3392_v21, %v3567_v16  ;;  %v1268_v3 = vmul.f32 %v3419_v44, %v3570_v47  ;;  %v1269_v58 = vmul.f32 %v3409_v36, %v3573_v17 }
 0x405   :  { %v1270_v27 = vmul.f32 %v3432_v50, %v3576_v51  ;;  %v1271_v54 = vmul.f32 %v3426_v48, %v3579_v18  ;;  %v1272_v29 = vmul.f32 %v3450_v2, %v3582_v19  ;;  %v1273_v25 = vmul.f32 %v3444_v0, %v3585_v31 }
 0x406   :  { %v1282_v5 = vmul.f32 %v1266_v42, %v1266_v42  ;;  %v1283_v52 = vmul.f32 %v1267_v35, %v1267_v35  ;;  %v1284_v55 = vmul.f32 %v1268_v3, %v1268_v3  ;;  %v1285_v56 = vmul.f32 %v1269_v58, %v1269_v58 }
 0x407   :  { %v1286_v28 = vmul.f32 %v1270_v27, %v1270_v27  ;;  %v1287_v38 = vmul.f32 %v1271_v54, %v1271_v54  ;;  %v1274_v11 = vmul.f32 %v3468_v37, %v3590_v30  ;;  %v1288_v13 = vmul.f32 %v1272_v29, %v1272_v29 }
 0x408   :  { %v1298_v63 = vsel %vm787_vm2, %v1282_v5, 0.0  ;;  %v1299_v4 = vsel %vm787_vm2, %v1283_v52, 0.0  ;;  %v1301_v33 = vsel %vm787_vm2, %v1284_v55, 0.0  ;;  %v1303_v9 = vsel %vm787_vm2, %v1285_v56, 0.0 }
 0x409   :  { %v1300_v23 = vadd.f32 %v1299_v4, %v1298_v63  ;;  %v1305_v14 = vsel %vm787_vm2, %v1286_v28, 0.0  ;;  %v1275_v35 = vmul.f32 %v3462_v34, %v3593_v39  ;;  %v1289_v3 = vmul.f32 %v1273_v25, %v1273_v25 }
 0x40a   :  { %v1307_v58 = vsel %vm787_vm2, %v1287_v38, 0.0  ;;  %v1276_v52 = vmul.f32 %v3492_v59, %v3596_v43  ;;  %v1290_v27 = vmul.f32 %v1274_v11, %v1274_v11  ;;  %v1309_v55 = vsel %vm787_vm2, %v1288_v13, 0.0 }
 0x40b   :  { %v1302_v8 = vadd.f32 %v1301_v33, %v1300_v23  ;;  %v1277_v56 = vmul.f32 %v3486_v57, %v3599_v49  ;;  %v1291_v63 = vmul.f32 %v1275_v35, %v1275_v35  ;;  %v1311_v4 = vsel %vm787_vm2, %v1289_v3, 0.0 }
 0x40c   :  { %v1278_v23 = vmul.f32 %v3510_v41, %v3601_v53  ;;  %v1292_v62 = vmul.f32 %v1276_v52, %v1276_v52  ;;  %v1313_v26 = vsel %vm787_vm2, %v1290_v27, 0.0  ;;  %v1279_v29 = vmul.f32 %v3504_v40, %v3604_v1 }
 0x40d   :  { %v1304_v10 = vadd.f32 %v1303_v9, %v1302_v8  ;;  %v1293_v28 = vmul.f32 %v1277_v56, %v1277_v56  ;;  %v1315_v33 = vsel %vm787_vm2, %v1291_v63, 0.0  ;;  %v1280_v8 = vmul.f32 %v3527_v6, %v3606_v22 }
 0x40e   :  { %v1294_v38 = vmul.f32 %v1278_v23, %v1278_v23  ;;  %v1317_v9 = vsel %vm787_vm2, %v1292_v62, 0.0  ;;  %v1281_v46 = vmul.f32 %v3523_v61, %v3608_v20 }
 0x40f   :  { %v1306_v42 = vadd.f32 %v1305_v14, %v1304_v10  ;;  %v1295_v10 = vmul.f32 %v1279_v29, %v1279_v29  ;;  %v1319_v11 = vsel %vm787_vm2, %v1293_v28, 0.0  ;;  %v1296_v14 = vmul.f32 %v1280_v8, %v1280_v8 }
 0x410   :  { %v1297_v3 = vmul.f32 %v1281_v46, %v1281_v46 }
 0x411   :  { %v1308_v5 = vadd.f32 %v1307_v58, %v1306_v42  ;;  %v1321_v42 = vsel %vm787_vm2, %v1294_v38, 0.0  ;;  %v1323_v58 = vsel %vm787_vm2, %v1295_v10, 0.0  ;;  %v1325_v52 = vsel %vm787_vm2, %v1296_v14, 0.0 }
 0x413   :  { %v1310_v54 = vadd.f32 %v1309_v55, %v1308_v5  ;;  %v1327_v55 = vsel %vm787_vm2, %v1297_v3, 0.0 }
 0x415   :  { %v1312_v7 = vadd.f32 %v1311_v4, %v1310_v54 }
 0x417   :  { %v1314_v24 = vadd.f32 %v1313_v26, %v1312_v7 }
 0x419   :  { %v1316_v25 = vadd.f32 %v1315_v33, %v1314_v24 }
 0x41b   :  { %v1318_v45 = vadd.f32 %v1317_v9, %v1316_v25 }
 0x41d   :  { %v1320_v13 = vadd.f32 %v1319_v11, %v1318_v45 }
 0x41f   :  { %v1322_v35 = vadd.f32 %v1321_v42, %v1320_v13 }
 0x421   :  { %v1324_v5 = vadd.f32 %v1323_v58, %v1322_v35 }
 0x423   :  { %v1326_v27 = vadd.f32 %v1325_v52, %v1324_v5 }
 0x425   :  { %v1328_v54 = vadd.f32 %v1327_v55, %v1326_v27 }
 0x427   :  { %v1329_v56 = vrot.slane %v1328_v54, 4 }
 0x429   :  { %v1330_v63 = vadd.f32 %v1329_v56, %v1328_v54 }
 0x42b   :  { %v1331_v4 = vrot.slane %v1330_v63, 2 }
 0x42d   :  { %v1332_v7 = vadd.f32 %v1331_v4, %v1330_v63 }
 0x42f   :  { %v1333_v23 = vrot.slane %v1332_v7, 1 }
 0x431   :  { %v1334_v62 = vadd.f32 %v1333_v23, %v1332_v7 }
 0x433   :  { %v1335_v26 = vmul.f32 %v1334_v62, %v3556_v12 }
 0x435   :  { %v1336_v24 = vadd.f32 1e-05, %v1335_v26 }
 0x437   :  { %2887 = vrsqrt.f32 %v1336_v24  ;;  %v2895_v24 = vld [vmem:[%s4041_s1 + $0x28] sm:$0xff]  }
 0x441   :  { %v2888_v29 = vpop.eup %2887 }
 0x442   :  { %v1338_v28 = vmul.f32 %v2888_v29, %v3564_v15  ;;  %v1339_v33 = vmul.f32 %v2888_v29, %v3567_v16  ;;  %v1340_v25 = vmul.f32 %v2888_v29, %v3570_v47  ;;  %v1341_v8 = vmul.f32 %v2888_v29, %v3573_v17 }
 0x443   :  { %v1342_v38 = vmul.f32 %v2888_v29, %v3576_v51  ;;  %v1343_v9 = vmul.f32 %v2888_v29, %v3579_v18  ;;  %v1344_v45 = vmul.f32 %v2888_v29, %v3582_v19  ;;  %v1345_v46 = vmul.f32 %v2888_v29, %v3585_v31 }
 0x444   :  { %v1354_v10 = vmax.f32 %v1338_v28, 0.0  ;;  %v1355_v11 = vmax.f32 %v1339_v33, 0.0  ;;  %v1356_v13 = vmax.f32 %v1340_v25, 0.0  ;;  %v1357_v14 = vmax.f32 %v1341_v8, 0.0  ;;  %v2897_v28 = vld [vmem:[%s4041_s1 + $0x38] sm:$0xff]  }
 0x445   :  { %v1358_v42 = vmax.f32 %v1342_v38, 0.0  ;;  %v1359_v15 = vmax.f32 %v1343_v9, 0.0  ;;  %v1360_v35 = vmax.f32 %v1344_v45, 0.0  ;;  %v1361_v16 = vmax.f32 %v1345_v46, 0.0 }
 0x446   :  { %v1370_v3 = vpack.c.bf16 %v1355_v11, %v1354_v10  ;;  %v1371_v47 = vpack.c.bf16 %v1357_v14, %v1356_v13  ;;  %v1346_v17 = vmul.f32 %v2888_v29, %v3590_v30  ;;  %v1347_v51 = vmul.f32 %v2888_v29, %v3593_v39 }
 0x447   :  { %v1372_v58 = vpack.c.bf16 %v1359_v15, %v1358_v42  ;;  %v1373_v18 = vpack.c.bf16 %v1361_v16, %v1360_v35  ;;  %v1348_v19 = vmul.f32 %v2888_v29, %v3596_v43  ;;  %v1349_v31 = vmul.f32 %v2888_v29, %v3599_v49 }
 0x448   :  { %2676 = vmatprep.subr.bf16.mxu1 %v1370_v3  ;;  %v1362_v5 = vmax.f32 %v1346_v17, 0.0  ;;  %v1363_v52 = vmax.f32 %v1347_v51, 0.0  ;;  %v1350_v27 = vmul.f32 %v2888_v29, %v3601_v53  ;;  %v1351_v55 = vmul.f32 %v2888_v29, %v3604_v1  ;;  %v2891_v53 = vld [vmem:[%s4041_s1 + $0x8] sm:$0xff]   ;;  %v2892_v1 = vld [vmem:[%s4041_s1 + $0x10] sm:$0xff]   ;;  %v127_v17 = vld [vmem:[%s4038_s4 + $0x118] sm:$0xff] }
 0x449   :  { %2677 = vmatpush3.bf16.msra.mxu1 %v1370_v3  ;;  %v1364_v54 = vmax.f32 %v1348_v19, 0.0  ;;  %v1365_v56 = vmax.f32 %v1349_v31, 0.0  ;;  %v1352_v30 = vmul.f32 %v2888_v29, %v3606_v22  ;;  %v1353_v39 = vmul.f32 %v2888_v29, %v3608_v20  ;;  %v2893_v22 = vld [vmem:[%s4041_s1 + $0x18] sm:$0xff]   ;;  %v2894_v20 = vld [vmem:[%s4041_s1 + $0x20] sm:$0xff]   ;;  %v2896_v29 = vld [vmem:[%s4041_s1 + $0x30] sm:$0xff]  }
 0x44a   :  { %2678 = vmatprep.subr.bf16.mxu1 %v1371_v47  ;;  %v1374_v63 = vpack.c.bf16 %v1363_v52, %v1362_v5  ;;  %v1366_v4 = vmax.f32 %v1350_v27, 0.0  ;;  %v1367_v43 = vmax.f32 %v1351_v55, 0.0  ;;  %v128_v51 = vld [vmem:[%s4038_s4 + $0x120] sm:$0xff]  ;;  %v130_v31 = vld [vmem:[%s4038_s4 + $0x130] sm:$0xff]  ;;  %v131_v5 = vld [vmem:[%s4038_s4 + $0x138] sm:$0xff] }
 0x44b   :  { %v1375_v7 = vpack.c.bf16 %v1365_v56, %v1364_v54  ;;  %v1368_v49 = vmax.f32 %v1352_v30, 0.0  ;;  %v1369_v23 = vmax.f32 %v1353_v39, 0.0  ;;  %v2861_v52 = vpack.c.bf16 %v131_v5, %v130_v31  ;;  %v132_v27 = vld [vmem:[%s4038_s4 + $0x140] sm:$0xff]  ;;  %v133_v55 = vld [vmem:[%s4038_s4 + $0x148] sm:$0xff] }
 0x44c   :  { %v1376_v62 = vpack.c.bf16 %v1367_v43, %v1366_v4  ;;  %v2865_v54 = vpack.c.bf16 %v133_v55, %v132_v27 }
 0x44d   :  { %2679 = vmatpush3.bf16.msra.mxu1 %v1371_v47  ;;  %v1377_v26 = vpack.c.bf16 %v1369_v23, %v1368_v49  ;;  %v126_v47 = vld [vmem:[%s4038_s4 + $0x110] sm:$0xff] }
 0x44e   :  { %2680 = vmatprep.subr.bf16.mxu1 %v1372_v58 }
 0x451   :  { %2681 = vmatpush3.bf16.msra.mxu1 %v1372_v58  ;;  %v2853_v58 = vpack.c.bf16 %v127_v17, %v126_v47 }
 0x452   :  { %2682 = vmatprep.subr.bf16.mxu1 %v1373_v18 }
 0x455   :  { %2683 = vmatpush3.bf16.msra.mxu1 %v1373_v18  ;;  %v129_v18 = vld [vmem:[%s4038_s4 + $0x128] sm:$0xff] }
 0x456   :  { %2684 = vmatprep.subr.bf16.mxu1 %v1374_v63  ;;  %v2857_v19 = vpack.c.bf16 %v129_v18, %v128_v51 }
 0x459   :  { %2685 = vmatpush3.bf16.msra.mxu1 %v1374_v63 }
 0x45a   :  { %2686 = vmatprep.subr.bf16.mxu1 %v1375_v7 }
 0x45d   :  { %2687 = vmatpush3.bf16.msra.mxu1 %v1375_v7 }
 0x45e   :  { %2688 = vmatprep.subr.bf16.mxu1 %v1376_v62 }
 0x461   :  { %2689 = vmatpush3.bf16.msra.mxu1 %v1376_v62 }
 0x462   :  { %2690 = vmatprep.subr.bf16.mxu1 %v1377_v26 }
 0x465   :  { %2691 = vmatpush3.bf16.msra.mxu1 %v1377_v26 }
 0x466   :  { %2854 = vmatprep.subr.bf16.mxu1 %v2853_v58 }
 0x468   :  { %2693 = vmatmul.mubr.bf16.vlgmr.msra.gmra.mrb[60].mxu1 %v2891_v53 }
 0x469   :  { %2696 = vmatprep.mubr.bf16.mxu1 %v2892_v1  ;;  %2856 = vmatpush3.bf16.msra.mxu1 %v2853_v58 }
 0x46a   :  { %2858 = vmatprep.subr.bf16.mxu1 %v2857_v19 }
 0x46d   :  { %2860 = vmatpush3.bf16.msra.mxu1 %v2857_v19 }
 0x46e   :  { %2862 = vmatprep.subr.bf16.mxu1 %v2861_v52 }
 0x470   :  { %2697 = vmatmul.mubr.bf16.gmra.mrb[64].mxu1 %v2893_v22 }
 0x471   :  { %2700 = vmatprep.mubr.bf16.mxu1 %v2894_v20  ;;  %2864 = vmatpush3.bf16.msra.mxu1 %v2861_v52 }
 0x472   :  { %2866 = vmatprep.subr.bf16.mxu1 %v2865_v54 }
 0x475   :  { %2868 = vmatpush3.bf16.msra.mxu1 %v2865_v54 }
 0x478   :  { %2701 = vmatmul.mubr.bf16.gmra.mrb[68].mxu1 %v2895_v24 }
 0x479   :  { %2704 = vmatprep.mubr.bf16.mxu1 %v2896_v29 }
 0x480   :  { %2705 = vmatmul.mubr.bf16.gmra.mrb[72].mxu1 %v2897_v28 }
 0x4af   :  { %v2654_v33 = vpop.f32.mrb[38].mxu0 }
 0x4b0   :  { %v1444_v25 = vpop.f32.mrb[39].mxu0 }
 0x4b3   :  { %v2657_v8 = vpop.f32.mrb[40].mxu0 }
 0x4b4   :  { %v1454_v38 = vpop.f32.mrb[41].mxu0 }
 0x4b7   :  { %v2660_v9 = vpop.f32.mrb[42].mxu0 }
 0x4b8   :  { %v1464_v45 = vpop.f32.mrb[43].mxu0 }
 0x4bb   :  { %v2663_v46 = vpop.f32.mrb[44].mxu0 }
 0x4bc   :  { %v1474_v10 = vpop.f32.mrb[45].mxu0 }
 0x4bf   :  { %v2666_v11 = vpop.f32.mrb[46].mxu0 }
 0x4c0   :  { %v1484_v13 = vpop.f32.mrb[47].mxu0 }
 0x4c3   :  { %v2669_v14 = vpop.f32.mrb[48].mxu0 }
 0x4c4   :  { %v1494_v42 = vpop.f32.mrb[49].mxu0 }
 0x4c7   :  { %v3708_v15 = vpop.f32.mrb[50].mxu0 }
 0x4c8   :  { %v1504_v35 = vpop.f32.mrb[51].mxu0 }
 0x4cb   :  { %v3710_v16 = vpop.f32.mrb[52].mxu0 }
 0x4cc   :  { %v1514_v3 = vpop.f32.mrb[53].mxu0 }
 0x53b   :  { %v2694_v56 = vpop.f32.mrb[60].mxu1 }
 0x53c   :  { %v1566_v30 = vadd.f32 %v2694_v56, %v1454_v38  ;;  %v1557_v39 = vpop.f32.mrb[61].mxu1 }
 0x53d   :  { %v1558_v63 = vadd.f32 %v1557_v39, %v1444_v25  ;;  %v2695_v4 = vpop.f32.mrb[62].mxu1 }
 0x53e   :  { %v1569_v43 = vadd.f32 %v2695_v4, %v2657_v8  ;;  %v1560_v7 = vpop.f32.mrb[63].mxu1 }
 0x53f   :  { %v1561_v49 = vadd.f32 %v2654_v33, %v1560_v7  ;;  %2716 = vmatprep.mubr.msk.f32.mxu0 %vm787_vm2, %v1558_v63 }
 0x541   :  { %2717 = vmatmul.mubr.msk.f32.vlgmr.msra.gmra.mrb[54].mxu0 %vm787_vm2, %v1561_v49 }
 0x542   :  { %2719 = vmatprep.mubr.msk.f32.mxu0 %vm787_vm2, %v1566_v30 }
 0x543   :  { %v2698_v23 = vpop.f32.mrb[64].mxu1 }
 0x544   :  { %v1582_v62 = vadd.f32 %v2698_v23, %v1474_v10  ;;  %v1573_v26 = vpop.f32.mrb[65].mxu1 }
 0x545   :  { %v1574_v53 = vadd.f32 %v1573_v26, %v1464_v45  ;;  %v2699_v1 = vpop.f32.mrb[66].mxu1  ;;  %2720 = vmatmul.mubr.msk.f32.gmra.mrb[56].mxu0 %vm787_vm2, %v1569_v43 }
 0x546   :  { %v1585_v22 = vadd.f32 %v2699_v1, %v2663_v46  ;;  %v1576_v20 = vpop.f32.mrb[67].mxu1 }
 0x547   :  { %v1577_v24 = vadd.f32 %v2660_v9, %v1576_v20  ;;  %2722 = vmatprep.mubr.msk.f32.mxu0 %vm787_vm2, %v1574_v53 }
 0x549   :  { %2723 = vmatmul.mubr.msk.f32.gmra.mrb[58].mxu0 %vm787_vm2, %v1577_v24 }
 0x54a   :  { %2725 = vmatprep.mubr.msk.f32.mxu0 %vm787_vm2, %v1582_v62 }
 0x54b   :  { %v2702_v29 = vpop.f32.mrb[68].mxu1 }
 0x54c   :  { %v1598_v28 = vadd.f32 %v2702_v29, %v1494_v42  ;;  %v1589_v33 = vpop.f32.mrb[69].mxu1 }
 0x54d   :  { %v1590_v25 = vadd.f32 %v1589_v33, %v1484_v13  ;;  %v2703_v8 = vpop.f32.mrb[70].mxu1  ;;  %2726 = vmatmul.mubr.msk.f32.gmra.mrb[60].mxu0 %vm787_vm2, %v1585_v22 }
 0x54e   :  { %v1601_v38 = vadd.f32 %v2703_v8, %v2669_v14  ;;  %v1592_v45 = vpop.f32.mrb[71].mxu1 }
 0x54f   :  { %v1593_v10 = vadd.f32 %v2666_v11, %v1592_v45  ;;  %2728 = vmatprep.mubr.msk.f32.mxu0 %vm787_vm2, %v1590_v25  ;;  %v145_v11 = vld [vmem:[%s4042_s5 + $0x48] sm:$0xff] }
 0x551   :  { %2729 = vmatmul.mubr.msk.f32.gmra.mrb[62].mxu0 %vm787_vm2, %v1593_v10 }
 0x552   :  { %2731 = vmatprep.mubr.msk.f32.mxu0 %vm787_vm2, %v1598_v28 }
 0x553   :  { %v2706_v9 = vpop.f32.mrb[72].mxu1 }
 0x554   :  { %v1614_v46 = vadd.f32 %v2706_v9, %v1514_v3  ;;  %v1605_v47 = vpop.f32.mrb[73].mxu1 }
 0x555   :  { %v1606_v17 = vadd.f32 %v1605_v47, %v1504_v35  ;;  %v2707_v51 = vpop.f32.mrb[74].mxu1  ;;  %2732 = vmatmul.mubr.msk.f32.gmra.mrb[64].mxu0 %vm787_vm2, %v1601_v38  ;;  %v1623_v35 = vrot.slane %v145_v11, %v3362_v60 }
 0x556   :  { %v1617_v13 = vadd.f32 %v2707_v51, %v3710_v16  ;;  %v1608_v42 = vpop.f32.mrb[75].mxu1 }
 0x557   :  { %v1609_v14 = vadd.f32 %v3708_v15, %v1608_v42  ;;  %2734 = vmatprep.mubr.msk.f32.mxu0 %vm787_vm2, %v1606_v17 }
 0x559   :  { %2735 = vmatmul.mubr.msk.f32.gmra.mrb[66].mxu0 %vm787_vm2, %v1609_v14 }
 0x55a   :  { %2737 = vmatprep.mubr.msk.f32.mxu0 %vm787_vm2, %v1614_v46 }
 0x55d   :  { %2738 = vmatmul.mubr.msk.f32.gmra.mrb[68].mxu0 %vm787_vm2, %v1617_v13 }
 0x614   :  { %v2718_v3 = vpop.f32.mrb[54].mxu0 }
 0x615   :  { %v1744_v58 = vadd.f32 %v2718_v3, %v1623_v35  ;;  %v1738_v16 = vpop.f32.mrb[55].mxu0 }
 0x616   :  { %v1739_v18 = vadd.f32 %v1738_v16, %v1623_v35 }
 0x617   :  { %v1818_v31 = vmax.f32 %v1744_v58, 0.0 }
 0x618   :  { %v1817_v19 = vmax.f32 %v1739_v18, 0.0  ;;  %v2721_v15 = vpop.f32.mrb[56].mxu0  ;;  %v135_v18 = vld [vmem:[%s4038_s4 + $0x158] sm:$0xff] }
 0x619   :  { %v1754_v5 = vadd.f32 %v2721_v15, %v1623_v35  ;;  %v1748_v52 = vpop.f32.mrb[57].mxu0 }
 0x61a   :  { %v1749_v27 = vadd.f32 %v1748_v52, %v1623_v35  ;;  %2756 = vmatprep.mubr.msk.f32.mxu1 %vm1001_vm3, %v1817_v19  ;;  %v3778_v19 = vrot.slane %v135_v18, %v3362_v60 }
 0x61b   :  { %2757 = vmatmul.mubr.msk.f32.vlgmr.msra.gmra.mrb[58].mxu1 %vm1001_vm3, %v1818_v31  ;;  %v1820_v56 = vmax.f32 %v1754_v5, 0.0 }
 0x61c   :  { %v1819_v55 = vmax.f32 %v1749_v27, 0.0  ;;  %v2724_v54 = vpop.f32.mrb[58].mxu0 }
 0x61d   :  { %v1764_v30 = vadd.f32 %v2724_v54, %v1623_v35  ;;  %v1758_v39 = vpop.f32.mrb[59].mxu0 }
 0x61e   :  { %v1759_v63 = vadd.f32 %v1758_v39, %v1623_v35  ;;  %2759 = vmatprep.mubr.msk.f32.mxu1 %vm1001_vm3, %v1819_v55 }
 0x61f   :  { %2760 = vmatmul.mubr.msk.f32.gmra.mrb[76].mxu1 %vm1001_vm3, %v1820_v56  ;;  %v1822_v7 = vmax.f32 %v1764_v30, 0.0 }
 0x620   :  { %v1821_v4 = vmax.f32 %v1759_v63, 0.0  ;;  %v2727_v43 = vpop.f32.mrb[60].mxu0 }
 0x621   :  { %v1774_v49 = vadd.f32 %v2727_v43, %v1623_v35  ;;  %v1768_v23 = vpop.f32.mrb[61].mxu0 }
 0x622   :  { %v1769_v62 = vadd.f32 %v1768_v23, %v1623_v35  ;;  %2762 = vmatprep.mubr.msk.f32.mxu1 %vm1001_vm3, %v1821_v4 }
 0x623   :  { %2763 = vmatmul.mubr.msk.f32.gmra.mrb[78].mxu1 %vm1001_vm3, %v1822_v7  ;;  %v1824_v1 = vmax.f32 %v1774_v49, 0.0 }
 0x624   :  { %v1823_v26 = vmax.f32 %v1769_v62, 0.0  ;;  %v2730_v53 = vpop.f32.mrb[62].mxu0 }
 0x625   :  { %v1784_v22 = vadd.f32 %v2730_v53, %v1623_v35  ;;  %v1778_v20 = vpop.f32.mrb[63].mxu0 }
 0x626   :  { %v1779_v24 = vadd.f32 %v1778_v20, %v1623_v35  ;;  %2765 = vmatprep.mubr.msk.f32.mxu1 %vm1001_vm3, %v1823_v26 }
 0x627   :  { %2766 = vmatmul.mubr.msk.f32.gmra.mrb[80].mxu1 %vm1001_vm3, %v1824_v1  ;;  %v1826_v33 = vmax.f32 %v1784_v22, 0.0 }
 0x628   :  { %v1825_v29 = vmax.f32 %v1779_v24, 0.0  ;;  %v2733_v28 = vpop.f32.mrb[64].mxu0 }
 0x629   :  { %v1794_v25 = vadd.f32 %v2733_v28, %v1623_v35  ;;  %v1788_v8 = vpop.f32.mrb[65].mxu0 }
 0x62a   :  { %v1789_v38 = vadd.f32 %v1788_v8, %v1623_v35  ;;  %2768 = vmatprep.mubr.msk.f32.mxu1 %vm1001_vm3, %v1825_v29 }
 0x62b   :  { %2769 = vmatmul.mubr.msk.f32.gmra.mrb[82].mxu1 %vm1001_vm3, %v1826_v33  ;;  %v1828_v9 = vmax.f32 %v1794_v25, 0.0 }
 0x62c   :  { %v1827_v45 = vmax.f32 %v1789_v38, 0.0  ;;  %v2736_v10 = vpop.f32.mrb[66].mxu0 }
 0x62d   :  { %v1804_v46 = vadd.f32 %v2736_v10, %v1623_v35  ;;  %v1798_v47 = vpop.f32.mrb[67].mxu0 }
 0x62e   :  { %v1799_v17 = vadd.f32 %v1798_v47, %v1623_v35  ;;  %2771 = vmatprep.mubr.msk.f32.mxu1 %vm1001_vm3, %v1827_v45 }
 0x62f   :  { %2772 = vmatmul.mubr.msk.f32.gmra.mrb[84].mxu1 %vm1001_vm3, %v1828_v9  ;;  %v1830_v42 = vmax.f32 %v1804_v46, 0.0 }
 0x630   :  { %v1829_v51 = vmax.f32 %v1799_v17, 0.0  ;;  %v2739_v13 = vpop.f32.mrb[68].mxu0 }
 0x631   :  { %v1814_v14 = vadd.f32 %v2739_v13, %v1623_v35  ;;  %v1808_v11 = vpop.f32.mrb[69].mxu0 }
 0x632   :  { %v1809_v3 = vadd.f32 %v1808_v11, %v1623_v35  ;;  %2774 = vmatprep.mubr.msk.f32.mxu1 %vm1001_vm3, %v1829_v51 }
 0x633   :  { %2775 = vmatmul.mubr.msk.f32.gmra.mrb[86].mxu1 %vm1001_vm3, %v1830_v42  ;;  %v1832_v16 = vmax.f32 %v1814_v14, 0.0 }
 0x634   :  { %v1831_v58 = vmax.f32 %v1809_v3, 0.0 }
 0x636   :  { %2777 = vmatprep.mubr.msk.f32.mxu1 %vm1001_vm3, %v1831_v58 }
 0x637   :  { %2778 = vmatmul.mubr.msk.f32.gmra.mrb[88].mxu1 %vm1001_vm3, %v1832_v16 }
 0x6ee   :  { %v2758_v15 = vpop.f32.mrb[58].mxu1 }
 0x6ef   :  { %v3781_v35 = vadd.f32 %v2758_v15, %v3778_v19  ;;  %v1951_v31 = vpop.f32.mrb[59].mxu1 }
 0x6f0   :  { %v3784_v5 = vadd.f32 %v1951_v31, %v3778_v19 }
 0x6f1   :  { %v2031_v52 = vmul.f32 %v3392_v21, %v3781_v35 }
 0x6f2   :  { %v2030_v27 = vmul.f32 %v3401_v32, %v3784_v5  ;;  %v2761_v55 = vpop.f32.mrb[76].mxu1 }
 0x6f3   :  { %v2047_v54 = vsel %vm787_vm2, %v2031_v52, 0.0  ;;  %v3792_v60 = vadd.f32 %v2761_v55, %v3778_v19  ;;  %v1961_v56 = vpop.f32.mrb[77].mxu1 }
 0x6f4   :  { %v2046_v30 = vsel %vm787_vm2, %v2030_v27, 0.0  ;;  %v3796_v39 = vadd.f32 %v1961_v56, %v3778_v19 }
 0x6f5   :  { %v2048_v63 = vadd.f32 %v2047_v54, %v2046_v30  ;;  %v2033_v4 = vmul.f32 %v3409_v36, %v3792_v60 }
 0x6f6   :  { %v2032_v43 = vmul.f32 %v3419_v44, %v3796_v39  ;;  %v2764_v7 = vpop.f32.mrb[78].mxu1 }
 0x6f7   :  { %v3803_v49 = vadd.f32 %v2764_v7, %v3778_v19  ;;  %v1971_v23 = vpop.f32.mrb[79].mxu1  ;;  %v2051_v1 = vsel %vm787_vm2, %v2033_v4, 0.0 }
 0x6f8   :  { %v2049_v62 = vsel %vm787_vm2, %v2032_v43, 0.0  ;;  %v3807_v26 = vadd.f32 %v1971_v23, %v3778_v19 }
 0x6f9   :  { %v2050_v53 = vadd.f32 %v2049_v62, %v2048_v63  ;;  %v2035_v22 = vmul.f32 %v3426_v48, %v3803_v49 }
 0x6fa   :  { %v2034_v20 = vmul.f32 %v3432_v50, %v3807_v26  ;;  %v2767_v24 = vpop.f32.mrb[80].mxu1 }
 0x6fb   :  { %v2052_v29 = vadd.f32 %v2051_v1, %v2050_v53  ;;  %v3815_v28 = vadd.f32 %v2767_v24, %v3778_v19  ;;  %v1981_v33 = vpop.f32.mrb[81].mxu1  ;;  %v2055_v45 = vsel %vm787_vm2, %v2035_v22, 0.0 }
 0x6fc   :  { %v2053_v25 = vsel %vm787_vm2, %v2034_v20, 0.0  ;;  %v3819_v8 = vadd.f32 %v1981_v33, %v3778_v19 }
 0x6fd   :  { %v2054_v38 = vadd.f32 %v2053_v25, %v2052_v29  ;;  %v2037_v10 = vmul.f32 %v3444_v0, %v3815_v28 }
 0x6fe   :  { %v2036_v9 = vmul.f32 %v3450_v2, %v3819_v8  ;;  %v2770_v46 = vpop.f32.mrb[82].mxu1 }
 0x6ff   :  { %v2056_v47 = vadd.f32 %v2055_v45, %v2054_v38  ;;  %v1997_v17 = vadd.f32 %v2770_v46, %v3778_v19  ;;  %v1991_v51 = vpop.f32.mrb[83].mxu1  ;;  %v2059_v11 = vsel %vm787_vm2, %v2037_v10, 0.0 }
 0x700   :  { %v2057_v13 = vsel %vm787_vm2, %v2036_v9, 0.0  ;;  %v1992_v42 = vadd.f32 %v1991_v51, %v3778_v19 }
 0x701   :  { %v2058_v14 = vadd.f32 %v2057_v13, %v2056_v47  ;;  %v2039_v3 = vmul.f32 %v3462_v34, %v1997_v17 }
 0x702   :  { %v2038_v58 = vmul.f32 %v3468_v37, %v1992_v42  ;;  %v2773_v16 = vpop.f32.mrb[84].mxu1 }
 0x703   :  { %v2060_v18 = vadd.f32 %v2059_v11, %v2058_v14  ;;  %v2007_v15 = vadd.f32 %v2773_v16, %v3778_v19  ;;  %v2001_v31 = vpop.f32.mrb[85].mxu1  ;;  %v2063_v54 = vsel %vm787_vm2, %v2039_v3, 0.0 }
 0x704   :  { %v2061_v52 = vsel %vm787_vm2, %v2038_v58, 0.0  ;;  %v2002_v27 = vadd.f32 %v2001_v31, %v3778_v19 }
 0x705   :  { %v2062_v55 = vadd.f32 %v2061_v52, %v2060_v18  ;;  %v2041_v56 = vmul.f32 %v3486_v57, %v2007_v15 }
 0x706   :  { %v2040_v30 = vmul.f32 %v3492_v59, %v2002_v27  ;;  %v2776_v63 = vpop.f32.mrb[86].mxu1 }
 0x707   :  { %v2064_v4 = vadd.f32 %v2063_v54, %v2062_v55  ;;  %v2017_v43 = vadd.f32 %v2776_v63, %v3778_v19  ;;  %v2011_v7 = vpop.f32.mrb[87].mxu1  ;;  %v2067_v1 = vsel %vm787_vm2, %v2041_v56, 0.0 }
 0x708   :  { %v2065_v23 = vsel %vm787_vm2, %v2040_v30, 0.0  ;;  %v2012_v62 = vadd.f32 %v2011_v7, %v3778_v19 }
 0x709   :  { %v2066_v53 = vadd.f32 %v2065_v23, %v2064_v4  ;;  %v2043_v22 = vmul.f32 %v3504_v40, %v2017_v43 }
 0x70a   :  { %v2042_v20 = vmul.f32 %v3510_v41, %v2012_v62  ;;  %v2779_v24 = vpop.f32.mrb[88].mxu1 }
 0x70b   :  { %v2068_v29 = vadd.f32 %v2067_v1, %v2066_v53  ;;  %v2027_v33 = vadd.f32 %v2779_v24, %v3778_v19  ;;  %v2021_v25 = vpop.f32.mrb[89].mxu1  ;;  %v2071_v9 = vsel %vm787_vm2, %v2043_v22, 0.0 }
 0x70c   :  { %v2069_v38 = vsel %vm787_vm2, %v2042_v20, 0.0  ;;  %v2022_v45 = vadd.f32 %v2021_v25, %v3778_v19 }
 0x70d   :  { %v2070_v10 = vadd.f32 %v2069_v38, %v2068_v29  ;;  %v2045_v46 = vmul.f32 %v3523_v61, %v2027_v33 }
 0x70e   :  { %v2044_v47 = vmul.f32 %v3527_v6, %v2022_v45 }
 0x70f   :  { %v2072_v51 = vadd.f32 %v2071_v9, %v2070_v10  ;;  %v2075_v11 = vsel %vm787_vm2, %v2045_v46, 0.0 }
 0x710   :  { %v2073_v13 = vsel %vm787_vm2, %v2044_v47, 0.0 }
 0x711   :  { %v2074_v14 = vadd.f32 %v2073_v13, %v2072_v51 }
 0x713   :  { %v2076_v3 = vadd.f32 %v2075_v11, %v2074_v14 }
 0x715   :  { %v2077_v58 = vrot.slane %v2076_v3, 4 }
 0x717   :  { %v2078_v16 = vadd.f32 %v2077_v58, %v2076_v3 }
 0x719   :  { %v2079_v18 = vrot.slane %v2078_v16, 2 }
 0x71b   :  { %v2080_v31 = vadd.f32 %v2079_v18, %v2078_v16 }
 0x71d   :  { %v2081_v52 = vrot.slane %v2080_v31, 1 }
 0x71f   :  { %v2082_v19 = vadd.f32 %v2081_v52, %v2080_v31 }
 0x721   :  { %v2083_v55 = vmul.f32 %v2082_v19, %v3556_v12 }
 0x723   :  { %v3854_v54 = vsub.f32 %v3784_v5, %v2083_v55  ;;  %v3857_v56 = vsub.f32 %v3781_v35, %v2083_v55  ;;  %v3860_v30 = vsub.f32 %v3796_v39, %v2083_v55  ;;  %v3863_v63 = vsub.f32 %v3792_v60, %v2083_v55 }
 0x724   :  { %v3866_v4 = vsub.f32 %v3807_v26, %v2083_v55  ;;  %v3869_v7 = vsub.f32 %v3803_v49, %v2083_v55  ;;  %v3872_v23 = vsub.f32 %v3819_v8, %v2083_v55  ;;  %v3875_v5 = vsub.f32 %v3815_v28, %v2083_v55 }
 0x725   :  { %v3877_v35 = vsub.f32 %v1992_v42, %v2083_v55  ;;  %v3879_v53 = vsub.f32 %v1997_v17, %v2083_v55  ;;  %v3881_v39 = vsub.f32 %v2002_v27, %v2083_v55  ;;  %v3883_v60 = vsub.f32 %v2007_v15, %v2083_v55 }
 0x726   :  { %v3885_v1 = vsub.f32 %v2012_v62, %v2083_v55  ;;  %v3887_v26 = vsub.f32 %v2017_v43, %v2083_v55  ;;  %v3889_v49 = vsub.f32 %v2022_v45, %v2083_v55  ;;  %v3891_v22 = vsub.f32 %v2027_v33, %v2083_v55 }
 0x727   :  { %v2100_v28 = vmul.f32 %v3401_v32, %v3854_v54  ;;  %v2101_v8 = vmul.f32 %v3392_v21, %v3857_v56  ;;  %v2102_v17 = vmul.f32 %v3419_v44, %v3860_v30  ;;  %v2103_v42 = vmul.f32 %v3409_v36, %v3863_v63 }
 0x728   :  { %v2104_v43 = vmul.f32 %v3432_v50, %v3866_v4  ;;  %v2105_v20 = vmul.f32 %v3426_v48, %v3869_v7  ;;  %v2106_v38 = vmul.f32 %v3450_v2, %v3872_v23  ;;  %v2107_v46 = vmul.f32 %v3444_v0, %v3875_v5 }
 0x729   :  { %v2116_v15 = vmul.f32 %v2100_v28, %v2100_v28  ;;  %v2117_v27 = vmul.f32 %v2101_v8, %v2101_v8  ;;  %v2118_v62 = vmul.f32 %v2102_v17, %v2102_v17  ;;  %v2119_v24 = vmul.f32 %v2103_v42, %v2103_v42 }
 0x72a   :  { %v2120_v45 = vmul.f32 %v2104_v43, %v2104_v43  ;;  %v2121_v47 = vmul.f32 %v2105_v20, %v2105_v20  ;;  %v2108_v14 = vmul.f32 %v3468_v37, %v3877_v35  ;;  %v2122_v11 = vmul.f32 %v2106_v38, %v2106_v38 }
 0x72b   :  { %v2132_v29 = vsel %vm787_vm2, %v2116_v15, 0.0  ;;  %v2133_v33 = vsel %vm787_vm2, %v2117_v27, 0.0  ;;  %v2135_v10 = vsel %vm787_vm2, %v2118_v62, 0.0  ;;  %v2137_v51 = vsel %vm787_vm2, %v2119_v24, 0.0 }
 0x72c   :  { %v2134_v25 = vadd.f32 %v2133_v33, %v2132_v29  ;;  %v2139_v3 = vsel %vm787_vm2, %v2120_v45, 0.0  ;;  %v2109_v16 = vmul.f32 %v3462_v34, %v3879_v53  ;;  %v2123_v18 = vmul.f32 %v2107_v46, %v2107_v46 }
 0x72d   :  { %v2141_v31 = vsel %vm787_vm2, %v2121_v47, 0.0  ;;  %v2110_v19 = vmul.f32 %v3492_v59, %v3881_v39  ;;  %v2124_v55 = vmul.f32 %v2108_v14, %v2108_v14  ;;  %v2143_v28 = vsel %vm787_vm2, %v2122_v11, 0.0 }
 0x72e   :  { %v2136_v9 = vadd.f32 %v2135_v10, %v2134_v25  ;;  %v2111_v17 = vmul.f32 %v3486_v57, %v3883_v60  ;;  %v2125_v42 = vmul.f32 %v2109_v16, %v2109_v16  ;;  %v2145_v15 = vsel %vm787_vm2, %v2123_v18, 0.0 }
 0x72f   :  { %v2112_v43 = vmul.f32 %v3510_v41, %v3885_v1  ;;  %v2126_v62 = vmul.f32 %v2110_v19, %v2110_v19  ;;  %v2147_v20 = vsel %vm787_vm2, %v2124_v55, 0.0  ;;  %v2113_v29 = vmul.f32 %v3504_v40, %v3887_v26 }
 0x730   :  { %v2138_v13 = vadd.f32 %v2137_v51, %v2136_v9  ;;  %v2127_v33 = vmul.f32 %v2111_v17, %v2111_v17  ;;  %v2149_v25 = vsel %vm787_vm2, %v2125_v42, 0.0  ;;  %v2114_v45 = vmul.f32 %v3527_v6, %v3889_v49 }
 0x731   :  { %v2128_v10 = vmul.f32 %v2112_v43, %v2112_v43  ;;  %v2151_v9 = vsel %vm787_vm2, %v2126_v62, 0.0  ;;  %v2115_v47 = vmul.f32 %v3523_v61, %v3891_v22  ;;  %v2129_v51 = vmul.f32 %v2113_v29, %v2113_v29 }
 0x732   :  { %v2140_v58 = vadd.f32 %v2139_v3, %v2138_v13  ;;  %v2153_v13 = vsel %vm787_vm2, %v2127_v33, 0.0  ;;  %v2130_v11 = vmul.f32 %v2114_v45, %v2114_v45 }
 0x733   :  { %v2155_v3 = vsel %vm787_vm2, %v2128_v10, 0.0  ;;  %v2131_v16 = vmul.f32 %v2115_v47, %v2115_v47  ;;  %v2157_v18 = vsel %vm787_vm2, %v2129_v51, 0.0 }
 0x734   :  { %v2142_v52 = vadd.f32 %v2141_v31, %v2140_v58 }
 0x735   :  { %v2161_v55 = vsel %vm787_vm2, %v2131_v16, 0.0 }
 0x736   :  { %v2144_v8 = vadd.f32 %v2143_v28, %v2142_v52  ;;  %v2159_v52 = vsel %vm787_vm2, %v2130_v11, 0.0 }
 0x738   :  { %v2146_v27 = vadd.f32 %v2145_v15, %v2144_v8 }
 0x73a   :  { %v2148_v24 = vadd.f32 %v2147_v20, %v2146_v27 }
 0x73c   :  { %v2150_v38 = vadd.f32 %v2149_v25, %v2148_v24 }
 0x73e   :  { %v2152_v46 = vadd.f32 %v2151_v9, %v2150_v38 }
 0x740   :  { %v2154_v14 = vadd.f32 %v2153_v13, %v2152_v46 }
 0x742   :  { %v2156_v58 = vadd.f32 %v2155_v3, %v2154_v14 }
 0x744   :  { %v2158_v31 = vadd.f32 %v2157_v18, %v2156_v58 }
 0x746   :  { %v2160_v19 = vadd.f32 %v2159_v52, %v2158_v31 }
 0x748   :  { %v2162_v28 = vadd.f32 %v2161_v55, %v2160_v19 }
 0x74a   :  { %v2163_v8 = vrot.slane %v2162_v28, 4 }
 0x74c   :  { %v2164_v17 = vadd.f32 %v2163_v8, %v2162_v28 }
 0x74e   :  { %v2165_v42 = vrot.slane %v2164_v17, 2 }
 0x750   :  { %v2166_v15 = vadd.f32 %v2165_v42, %v2164_v17 }
 0x752   :  { %v2167_v27 = vrot.slane %v2166_v15, 1 }
 0x754   :  { %v2168_v43 = vadd.f32 %v2167_v27, %v2166_v15 }
 0x756   :  { %v2169_v62 = vmul.f32 %v2168_v43, %v3556_v12 }
 0x758   :  { %v2170_v20 = vadd.f32 1e-05, %v2169_v62 }
 0x75a   :  { %2889 = vrsqrt.f32 %v2170_v20 }
 0x764   :  { %v2890_v24 = vpop.eup %2889 }
 0x765   :  { %v2172_v29 = vmul.f32 %v2890_v24, %v3854_v54  ;;  %v2173_v33 = vmul.f32 %v2890_v24, %v3857_v56  ;;  %v2174_v25 = vmul.f32 %v2890_v24, %v3860_v30  ;;  %v2175_v38 = vmul.f32 %v2890_v24, %v3863_v63 }
 0x766   :  { %v2176_v45 = vmul.f32 %v2890_v24, %v3866_v4  ;;  %v2177_v10 = vmul.f32 %v2890_v24, %v3869_v7  ;;  %v2178_v9 = vmul.f32 %v2890_v24, %v3872_v23  ;;  %v2179_v46 = vmul.f32 %v2890_v24, %v3875_v5 }
 0x767   :  { %v2180_v12 = vmul.f32 %v2890_v24, %v3877_v35  ;;  %v2181_v47 = vmul.f32 %v2890_v24, %v3879_v53  ;;  %v2182_v54 = vmul.f32 %v2890_v24, %v3881_v39  ;;  %v2183_v56 = vmul.f32 %v2890_v24, %v3883_v60 }
 0x768   :  { %v2184_v30 = vmul.f32 %v2890_v24, %v3885_v1  ;;  %v2185_v63 = vmul.f32 %v2890_v24, %v3887_v26  ;;  %v2186_v4 = vmul.f32 %v2890_v24, %v3889_v49  ;;  %v2187_v7 = vmul.f32 %v2890_v24, %v3891_v22 }
 0x769   :  { %v2188_v23 = vmul.f32 %v3401_v32, %v2172_v29  ;;  %v2189_v5 = vmul.f32 %v3392_v21, %v2173_v33  ;;  %v2190_v35 = vmul.f32 %v3419_v44, %v2174_v25  ;;  %v2191_v53 = vmul.f32 %v3409_v36, %v2175_v38 }
 0x76a   :  { %v2192_v39 = vmul.f32 %v3432_v50, %v2176_v45  ;;  %v2193_v60 = vmul.f32 %v3426_v48, %v2177_v10  ;;  %v2194_v1 = vmul.f32 %v3450_v2, %v2178_v9  ;;  %v2195_v26 = vmul.f32 %v3444_v0, %v2179_v46 }
 0x76b   :  { %v2196_v49 = vmul.f32 %v3468_v37, %v2180_v12  ;;  %v2197_v22 = vmul.f32 %v3462_v34, %v2181_v47  ;;  %v2198_v32 = vmul.f32 %v3492_v59, %v2182_v54  ;;  %v2199_v21 = vmul.f32 %v3486_v57, %v2183_v56  ;;  %2204 = vst.msk [vmem:[%s4044_s6] sm:$0xff] %vm787_vm2, %v2188_v23 }
 0x76c   :  { %2205 = vst.msk [vmem:[%s4044_s6 + $0x8] sm:$0xff] %vm787_vm2, %v2189_v5  ;;  %2206 = vst.msk [vmem:[%s4044_s6 + $0x10] sm:$0xff] %vm787_vm2, %v2190_v35  ;;  %v2200_v36 = vmul.f32 %v3510_v41, %v2184_v30  ;;  %v2201_v44 = vmul.f32 %v3504_v40, %v2185_v63  ;;  %v2202_v48 = vmul.f32 %v3527_v6, %v2186_v4 }
 0x76d   :  { %2207 = vst.msk [vmem:[%s4044_s6 + $0x18] sm:$0xff] %vm787_vm2, %v2191_v53  ;;  %v2203_v50 = vmul.f32 %v3523_v61, %v2187_v7  ;;  %2208 = vst.msk [vmem:[%s4044_s6 + $0x20] sm:$0xff] %vm787_vm2, %v2192_v39 }
 0x76e   :  { %2209 = vst.msk [vmem:[%s4044_s6 + $0x28] sm:$0xff] %vm787_vm2, %v2193_v60  ;;  %2210 = vst.msk [vmem:[%s4044_s6 + $0x30] sm:$0xff] %vm787_vm2, %v2194_v1 }
 0x76f   :  { %2211 = vst.msk [vmem:[%s4044_s6 + $0x38] sm:$0xff] %vm787_vm2, %v2195_v26  ;;  %2212 = vst.msk [vmem:[%s4044_s6 + $0x40] sm:$0xff] %vm787_vm2, %v2196_v49 }
 0x770   :  { %2213 = vst.msk [vmem:[%s4044_s6 + $0x48] sm:$0xff] %vm787_vm2, %v2197_v22  ;;  %2214 = vst.msk [vmem:[%s4044_s6 + $0x50] sm:$0xff] %vm787_vm2, %v2198_v32 }
 0x771   :  { %2215 = vst.msk [vmem:[%s4044_s6 + $0x58] sm:$0xff] %vm787_vm2, %v2199_v21  ;;  %2216 = vst.msk [vmem:[%s4044_s6 + $0x60] sm:$0xff] %vm787_vm2, %v2200_v36 }
 0x772   :  { %2217 = vst.msk [vmem:[%s4044_s6 + $0x68] sm:$0xff] %vm787_vm2, %v2201_v44  ;;  %2218 = vst.msk [vmem:[%s4044_s6 + $0x70] sm:$0xff] %vm787_vm2, %v2202_v48 }
 0x773   :  { %2219 = vst.msk [vmem:[%s4044_s6 + $0x78] sm:$0xff] %vm787_vm2, %v2203_v50 }

</bundles_post_ra>
